<compile_context>
chip_gen: v5e
topology: v5e:2x2
jax: 0.10.0
libtpu: 0.0.40
codegen_flags: <defaults>
</compile_context>

<pallas_src>
import functools

import jax
import jax.numpy as jnp
from jax.experimental import pallas as pl
from jax.experimental.pallas import tpu as pltpu

K = 7      # conv kernel size
PAD = 3    # conv padding


def _cdiv(a, b):
    return -(-a // b)


def _round_up(a, b):
    return _cdiv(a, b) * b


def _spatial_attention_kernel(idx_ref, w_ref, x_ref, o_ref,
                              sum_ref, max_ref, shift_ref, *,
                              C, H, W, c_chunk, r_rows, groups, has_tail):
    # idx_ref   : VMEM (2, HW) int32    row 0 = column index, row 1 = row index
    # w_ref     : VMEM (16, 128) f32    w_ref[j, i]   = conv_w[0, 0, i, j]
    #                                   w_ref[8+j, i] = conv_w[0, 1, i, j]
    #                                   (rows 7, 15 and lanes >= K are zero)
    # x_ref     : VMEM (1, c_chunk, HW) one channel chunk of one batch element
    # o_ref     : VMEM (1, 1, HW)
    # sum_ref   : VMEM (r_rows, HW) f32 running per-sublane channel sum
    # max_ref   : VMEM (r_rows, HW) f32 running per-sublane channel max
    # shift_ref : VMEM (16, HW) f32     stacked column-shifted tap maps
    HW = H * W
    c = pl.program_id(1)

    # ---- per-step partial channel reduction, kept 8-sublane dense -----------
    csum = None
    cmax = None
    for g in range(groups):
        blk = x_ref[0, g * r_rows:(g + 1) * r_rows, :].astype(jnp.float32)
        if has_tail:
            # Channel indices of this slab; out-of-range rows (ragged last
            # chunk -> unspecified DMA padding) contribute 0 / -inf.
            ch = (jax.lax.broadcasted_iota(jnp.int32, (r_rows, HW), 0)
                  + (c * c_chunk + g * r_rows))
            valid = ch < C
            bsum = jnp.where(valid, blk, 0.0)
            bmax = jnp.where(valid, blk, -jnp.inf)
        else:
            bsum = blk
            bmax = blk
        csum = bsum if csum is None else csum + bsum
        cmax = bmax if cmax is None else jnp.maximum(cmax, bmax)

    @pl.when(c == 0)
    def _init():
        sum_ref[...] = jnp.zeros_like(sum_ref)
        max_ref[...] = jnp.full_like(max_ref, -jnp.inf)

    sum_ref[...] += csum
    max_ref[...] = jnp.maximum(max_ref[...], cmax)

    # ---- last channel step: 8->1 reduce, 7x7 conv (VPU/XLU), sigmoid --------
    @pl.when(c == pl.num_programs(1) - 1)
    def _finalize():
        avg = (jnp.sum(sum_ref[...], axis=0, keepdims=True)
               * jnp.float32(1.0 / C))                         # (1, HW)
        mx = jnp.max(max_ref[...], axis=0, keepdims=True)      # (1, HW)

        colv = idx_ref[0:1, :]                                 # (1, HW) int32
        rowv = idx_ref[1:2, :]

        # Stack the 2*7 column-shifted, border-zeroed tap maps into the
        # (16, HW) scratch: rows 0..6 = avg taps dx=-3..3, row 7 = 0,
        # rows 8..14 = max taps, row 15 = 0.
        for ci, feat in enumerate((avg, mx)):
            for j in range(K):
                dx = j - PAD
                if dx == 0:
                    g = feat                                   # identity tap: no roll/mask
                else:
                    g = pltpu.roll(feat, shift=(-dx) % HW, axis=1)
                    g = jnp.where((colv >= -dx) & (colv < W - dx), g, 0.0)
                shift_ref[ci * 8 + j:ci * 8 + j + 1, :] = g
            shift_ref[ci * 8 + K:ci * 8 + K + 1, :] = jnp.zeros((1, HW), jnp.float32)

        stacked = shift_ref[...]                               # (16, HW)
        wfull = w_ref[...]                                     # (16, 128)
        acc = jnp.zeros((1, HW), jnp.float32)
        for i in range(K):
            dy = i - PAD
            wcol = wfull[:, i:i + 1]                           # (16, 1)
            # One full-density multiply + one cross-sublane reduce per kernel row.
            part = jnp.sum(stacked * wcol, axis=0, keepdims=True)
            if dy != 0:
                part = pltpu.roll(part, shift=(-dy * W) % HW, axis=1)
                part = jnp.where((rowv >= -dy) & (rowv < H - dy), part, 0.0)
            acc = acc + part
        o_ref[0] = jax.nn.sigmoid(acc).astype(o_ref.dtype)


def _vmem_plan():
    """Generation-aware (per-x-buffer DMA budget, vmem_limit_bytes)."""
    try:
        cap = int(pltpu.get_tpu_info().vmem_capacity_bytes)
    except Exception:
        cap = 64 << 20                    # assume smallest (v7x-class) if unknown
    if cap <= (64 << 20):                 # v7x: 64 MiB physical VMEM
        return 8 << 20, 48 << 20
    return 12 << 20, 96 << 20             # v5e / v6e: 128 MiB physical VMEM


def _pick_c_chunk(C, HW, itemsize, budget_bytes):
    """Largest channel chunk whose (chunk, HW) block fits the per-buffer budget.

    The chunk is a multiple of the dtype's sublane pack (8 f32 / 16 bf16 /
    32 int8-fp8); a non-dividing tail is masked in-kernel, so the chunk can
    track the budget exactly instead of hunting for divisors of C.
    """
    pack = max(8, 32 // max(1, itemsize))
    if C * HW * itemsize <= budget_bytes or C <= pack:
        return C
    per_chan = HW * itemsize
    chunk = max(pack, (budget_bytes // per_chan) // pack * pack)
    if chunk >= C:
        return C
    # Even out the chunks over the implied number of grid steps.
    n_c = _cdiv(C, chunk)
    return _round_up(_cdiv(C, n_c), pack)


def spatial_attention(x, conv_w, *, c_chunk=None):
    """x: (N, C, H, W); conv_w: (1, 2, 7, 7). Returns sigmoid attention map (N, 1, H, W)."""
    N, C, H, W = x.shape
    HW = H * W
    itemsize = x.dtype.itemsize

    per_buf_budget, vmem_limit = _vmem_plan()
    if c_chunk is None:
        c_chunk = _pick_c_chunk(C, HW, itemsize, per_buf_budget)
    assert c_chunk == C or c_chunk % 8 == 0, c_chunk

    n_c = _cdiv(C, c_chunk)
    has_tail = (C % c_chunk) != 0
    if c_chunk % 8 == 0:
        r_rows, groups = 8, c_chunk // 8
    else:                                  # tiny C (< 8): single narrow slab
        r_rows, groups = c_chunk, 1

    # Lane-dense layout: flatten spatial dims so the channel reduction and the
    # output store use full 128-lane vregs.  (No HW padding on purpose.)
    x_flat = x.reshape(N, C, HW)

    # Conv weights laid out as per-kernel-row sublane columns (lanes padded to 128):
    #   w_cols[j, i] = w[ci=0, ky=i, kx=j]; w_cols[8+j, i] = w[ci=1, ky=i, kx=j].
    w = conv_w.reshape(2, K, K).astype(jnp.float32)
    w_cols = jnp.zeros((16, 128), jnp.float32)
    w_cols = w_cols.at[0:K, 0:K].set(w[0].T)
    w_cols = w_cols.at[8:8 + K, 0:K].set(w[1].T)

    # Flat spatial (column, row) indices; the 12 border masks are built from
    # these in-kernel, so only 2*HW int32 (vs 14*HW f32) is DMA'd, once.
    idx = jnp.arange(HW, dtype=jnp.int32)
    colrow = jnp.stack([idx % W, idx // W], axis=0)            # (2, HW) int32

    kernel = functools.partial(
        _spatial_attention_kernel, C=C, H=H, W=W, c_chunk=c_chunk,
        r_rows=r_rows, groups=groups, has_tail=has_tail)

    out_flat = pl.pallas_call(
        kernel,
        out_shape=jax.ShapeDtypeStruct((N, 1, HW), x.dtype),
        grid_spec=pltpu.PrefetchScalarGridSpec(
            num_scalar_prefetch=0,
            grid=(N, n_c),
            in_specs=[
                pl.BlockSpec((2, HW), lambda n, c: (0, 0)),              # (col,row) idx
                pl.BlockSpec((16, 128), lambda n, c: (0, 0)),            # conv weights
                pl.BlockSpec((1, c_chunk, HW), lambda n, c: (n, c, 0)),  # x chunk
            ],
            out_specs=pl.BlockSpec((1, 1, HW), lambda n, c: (n, 0, 0)),
            scratch_shapes=[
                pltpu.VMEM((r_rows, HW), jnp.float32),   # running channel sum
                pltpu.VMEM((r_rows, HW), jnp.float32),   # running channel max
                pltpu.VMEM((16, HW), jnp.float32),       # shifted tap maps (finalize)
            ],
        ),
        compiler_params=pltpu.CompilerParams(
            dimension_semantics=("parallel", "arbitrary"),
            vmem_limit_bytes=vmem_limit),
    )(colrow, w_cols, x_flat)
    return out_flat.reshape(N, 1, H, W)


def spatial_attention_ref(x, conv_w):
    avg = jnp.mean(x, axis=1, keepdims=True)
    mx = jnp.max(x, axis=1, keepdims=True)
    cat = jnp.concatenate([avg, mx], axis=1)
    y = jax.lax.conv_general_dilated(
        cat, conv_w, window_strides=(1, 1),
        padding=((PAD, PAD), (PAD, PAD)),
        dimension_numbers=("NCHW", "OIHW", "NCHW"))
    return jax.nn.sigmoid(y)


if __name__ == "__main__":
    key = jax.random.PRNGKey(0)
    kx, kw, kx2, kx3 = jax.random.split(key, 4)

    # Deterministic synthetic conv weights (nn.Conv2d(2, 1, 7, bias=False)).
    conv_w = jax.random.normal(kw, (1, 2, K, K), dtype=jnp.float32) * 0.1

    # Case 1: module-sized input (N, C, H, W) = (2, 4, 16, 16).
    N, C, H, W = 2, 4, 16, 16
    x = jax.random.normal(kx, (N, C, H, W), dtype=jnp.float32)
    out = jax.block_until_ready(spatial_attention(x, conv_w))
    ref = spatial_attention_ref(x, conv_w)
    assert out.shape == (N, 1, H, W)
    assert jnp.allclose(out, ref, atol=1e-5, rtol=1e-5), "mismatch vs reference (case 1)"

    # Case 2: channel-blocked running reduction (two C grid steps).
    x2 = jax.random.normal(kx2, (2, 16, 16, 16), dtype=jnp.float32)
    out2 = jax.block_until_ready(spatial_attention(x2, conv_w, c_chunk=8))
    ref2 = spatial_attention_ref(x2, conv_w)
    assert jnp.allclose(out2, ref2, atol=1e-5, rtol=1e-5), "mismatch vs reference (case 2)"

    # Case 3: non-dividing C (masked tail chunk) + non-square spatial.
    x3 = jax.random.normal(kx3, (2, 12, 8, 16), dtype=jnp.float32)
    out3 = jax.block_until_ready(spatial_attention(x3, conv_w, c_chunk=8))
    ref3 = spatial_attention_ref(x3, conv_w)
    assert jnp.allclose(out3, ref3, atol=1e-5, rtol=1e-5), "mismatch vs reference (case 3)"

    print("KERNEL_OK")
</pallas_src>

<mosaic_0001>
module attributes {stable_mosaic.version = 11 : i64} {
  func.func @_spatial_attention_kernel(%arg0: i32, %arg1: i32, %arg2: memref<2x256xi32, #tpu.memory_space<vmem>>, %arg3: memref<16x128xf32, #tpu.memory_space<vmem>>, %arg4: memref<1x4x256xf32, #tpu.memory_space<vmem>>, %arg5: memref<1x1x256xf32, #tpu.memory_space<vmem>>, %arg6: memref<4x256xf32, #tpu.memory_space<vmem>>, %arg7: memref<4x256xf32, #tpu.memory_space<vmem>>, %arg8: memref<16x256xf32, #tpu.memory_space<vmem>>) attributes {dimension_semantics = [#tpu.dimension_semantics<parallel>, #tpu.dimension_semantics<arbitrary>], iteration_bounds = array<i64: 2, 1>, scalar_prefetch = 0 : i64, scratch_operands = 3 : i64, tpu.core_type = #tpu.core_type<tc>, window_params = [{pipeline_mode = #tpu.pipeline_mode<synchronous>, transform_indices = @transform_0, window_bounds = array<i64: 2, 256>}, {pipeline_mode = #tpu.pipeline_mode<synchronous>, transform_indices = @transform_1, window_bounds = array<i64: 16, 128>}, {transform_indices = @transform_2, window_bounds = array<i64: 1, 4, 256>}, {transform_indices = @transform_3, window_bounds = array<i64: 1, 1, 256>}]} {
    %c0 = arith.constant 0 : index
    %c0_0 = arith.constant 0 : index
    %c0_1 = arith.constant 0 : index
    %0 = vector.load %arg4[%c0, %c0_0, %c0_1] : memref<1x4x256xf32, #tpu.memory_space<vmem>>, vector<1x4x256xf32>
    %1 = vector.shape_cast %0 : vector<1x4x256xf32> to vector<4x256xf32>
    %c0_i32 = arith.constant 0 : i32
    %2 = arith.cmpi eq, %arg1, %c0_i32 : i32
    %3 = arith.extui %2 : i1 to i32
    %c0_i32_2 = arith.constant 0 : i32
    %4 = arith.cmpi ne, %3, %c0_i32_2 : i32
    scf.if %4 {
      %cst = arith.constant 0.000000e+00 : f32
      %14 = vector.broadcast %cst : f32 to vector<4x256xf32>
      %c0_13 = arith.constant 0 : index
      %c0_14 = arith.constant 0 : index
      %15 = vector.load %arg6[%c0_13, %c0_14] : memref<4x256xf32, #tpu.memory_space<vmem>>, vector<4x256xf32>
      tpu.vector_store %arg6[%c0_13, %c0_14], %14 {strides = array<i32>} : memref<4x256xf32, #tpu.memory_space<vmem>>, vector<4x256xf32>,
      %cst_15 = arith.constant 0xFF800000 : f32
      %16 = vector.broadcast %cst_15 : f32 to vector<4x256xf32>
      %c0_16 = arith.constant 0 : index
      %c0_17 = arith.constant 0 : index
      %17 = vector.load %arg7[%c0_16, %c0_17] : memref<4x256xf32, #tpu.memory_space<vmem>>, vector<4x256xf32>
      tpu.vector_store %arg7[%c0_16, %c0_17], %16 {strides = array<i32>} : memref<4x256xf32, #tpu.memory_space<vmem>>, vector<4x256xf32>,
    } else {
    }
    %c0_3 = arith.constant 0 : index
    %c0_4 = arith.constant 0 : index
    %5 = vector.load %arg6[%c0_3, %c0_4] : memref<4x256xf32, #tpu.memory_space<vmem>>, vector<4x256xf32>
    %6 = arith.addf %5, %1 : vector<4x256xf32>
    %c0_5 = arith.constant 0 : index
    %c0_6 = arith.constant 0 : index
    %7 = vector.load %arg6[%c0_5, %c0_6] : memref<4x256xf32, #tpu.memory_space<vmem>>, vector<4x256xf32>
    tpu.vector_store %arg6[%c0_5, %c0_6], %6 {strides = array<i32>} : memref<4x256xf32, #tpu.memory_space<vmem>>, vector<4x256xf32>,
    %c0_7 = arith.constant 0 : index
    %c0_8 = arith.constant 0 : index
    %8 = vector.load %arg7[%c0_7, %c0_8] : memref<4x256xf32, #tpu.memory_space<vmem>>, vector<4x256xf32>
    %9 = arith.maximumf %8, %1 : vector<4x256xf32>
    %c0_9 = arith.constant 0 : index
    %c0_10 = arith.constant 0 : index
    %10 = vector.load %arg7[%c0_9, %c0_10] : memref<4x256xf32, #tpu.memory_space<vmem>>, vector<4x256xf32>
    tpu.vector_store %arg7[%c0_9, %c0_10], %9 {strides = array<i32>} : memref<4x256xf32, #tpu.memory_space<vmem>>, vector<4x256xf32>,
    %c0_i32_11 = arith.constant 0 : i32
    %11 = arith.cmpi eq, %arg1, %c0_i32_11 : i32
    %12 = arith.extui %11 : i1 to i32
    %c0_i32_12 = arith.constant 0 : i32
    %13 = arith.cmpi ne, %12, %c0_i32_12 : i32
    scf.if %13 {
      %c0_13 = arith.constant 0 : index
      %c0_14 = arith.constant 0 : index
      %14 = vector.load %arg6[%c0_13, %c0_14] : memref<4x256xf32, #tpu.memory_space<vmem>>, vector<4x256xf32>
      %cst = arith.constant dense<0.000000e+00> : vector<256xf32>
      %15 = vector.multi_reduction <add>, %14, %cst [0] : vector<4x256xf32> to vector<256xf32>
      %16 = vector.shape_cast %15 : vector<256xf32> to vector<1x256xf32>
      %cst_15 = arith.constant 2.500000e-01 : f32
      %17 = vector.broadcast %cst_15 : f32 to vector<1x256xf32>
      %18 = arith.mulf %16, %17 : vector<1x256xf32>
      %c0_16 = arith.constant 0 : index
      %c0_17 = arith.constant 0 : index
      %19 = vector.load %arg7[%c0_16, %c0_17] : memref<4x256xf32, #tpu.memory_space<vmem>>, vector<4x256xf32>
      %cst_18 = arith.constant dense<0xFF800000> : vector<256xf32>
      %20 = vector.multi_reduction <maximumf>, %19, %cst_18 [0] : vector<4x256xf32> to vector<256xf32>
      %21 = vector.shape_cast %20 : vector<256xf32> to vector<1x256xf32>
      %c0_19 = arith.constant 0 : index
      %c0_20 = arith.constant 0 : index
      %22 = vector.load %arg2[%c0_19, %c0_20] : memref<2x256xi32, #tpu.memory_space<vmem>>, vector<1x256xi32>
      %c1 = arith.constant 1 : index
      %c0_21 = arith.constant 0 : index
      %23 = vector.load %arg2[%c1, %c0_21] : memref<2x256xi32, #tpu.memory_space<vmem>>, vector<1x256xi32>
      %c3_i32 = arith.constant 3 : i32
      %24 = tpu.dynamic_rotate %18 by %c3_i32 dim 1 : vector<1x256xf32>, i32 -> vector<1x256xf32>
      %c3_i32_22 = arith.constant 3 : i32
      %25 = vector.broadcast %c3_i32_22 : i32 to vector<1x256xi32>
      %26 = arith.cmpi sge, %22, %25 : vector<1x256xi32>
      %c19_i32 = arith.constant 19 : i32
      %27 = vector.broadcast %c19_i32 : i32 to vector<1x256xi32>
      %28 = arith.cmpi slt, %22, %27 : vector<1x256xi32>
      %29 = arith.andi %26, %28 : vector<1x256xi1>
      %cst_23 = arith.constant 0.000000e+00 : f32
      %30 = vector.broadcast %cst_23 : f32 to vector<1x256xf32>
      %31 = arith.select %29, %24, %30 : vector<1x256xi1>, vector<1x256xf32>
      %c0_24 = arith.constant 0 : index
      %c0_25 = arith.constant 0 : index
      %32 = vector.load %arg8[%c0_24, %c0_25] : memref<16x256xf32, #tpu.memory_space<vmem>>, vector<1x256xf32>
      tpu.vector_store %arg8[%c0_24, %c0_25], %31 {strides = array<i32>} : memref<16x256xf32, #tpu.memory_space<vmem>>, vector<1x256xf32>,
      %c2_i32 = arith.constant 2 : i32
      %33 = tpu.dynamic_rotate %18 by %c2_i32 dim 1 : vector<1x256xf32>, i32 -> vector<1x256xf32>
      %c2_i32_26 = arith.constant 2 : i32
      %34 = vector.broadcast %c2_i32_26 : i32 to vector<1x256xi32>
      %35 = arith.cmpi sge, %22, %34 : vector<1x256xi32>
      %c18_i32 = arith.constant 18 : i32
      %36 = vector.broadcast %c18_i32 : i32 to vector<1x256xi32>
      %37 = arith.cmpi slt, %22, %36 : vector<1x256xi32>
      %38 = arith.andi %35, %37 : vector<1x256xi1>
      %cst_27 = arith.constant 0.000000e+00 : f32
      %39 = vector.broadcast %cst_27 : f32 to vector<1x256xf32>
      %40 = arith.select %38, %33, %39 : vector<1x256xi1>, vector<1x256xf32>
      %c1_28 = arith.constant 1 : index
      %c0_29 = arith.constant 0 : index
      %41 = vector.load %arg8[%c1_28, %c0_29] : memref<16x256xf32, #tpu.memory_space<vmem>>, vector<1x256xf32>
      tpu.vector_store %arg8[%c1_28, %c0_29], %40 {strides = array<i32>} : memref<16x256xf32, #tpu.memory_space<vmem>>, vector<1x256xf32>,
      %c1_i32 = arith.constant 1 : i32
      %42 = tpu.dynamic_rotate %18 by %c1_i32 dim 1 : vector<1x256xf32>, i32 -> vector<1x256xf32>
      %c1_i32_30 = arith.constant 1 : i32
      %43 = vector.broadcast %c1_i32_30 : i32 to vector<1x256xi32>
      %44 = arith.cmpi sge, %22, %43 : vector<1x256xi32>
      %c17_i32 = arith.constant 17 : i32
      %45 = vector.broadcast %c17_i32 : i32 to vector<1x256xi32>
      %46 = arith.cmpi slt, %22, %45 : vector<1x256xi32>
      %47 = arith.andi %44, %46 : vector<1x256xi1>
      %cst_31 = arith.constant 0.000000e+00 : f32
      %48 = vector.broadcast %cst_31 : f32 to vector<1x256xf32>
      %49 = arith.select %47, %42, %48 : vector<1x256xi1>, vector<1x256xf32>
      %c2 = arith.constant 2 : index
      %c0_32 = arith.constant 0 : index
      %50 = vector.load %arg8[%c2, %c0_32] : memref<16x256xf32, #tpu.memory_space<vmem>>, vector<1x256xf32>
      tpu.vector_store %arg8[%c2, %c0_32], %49 {strides = array<i32>} : memref<16x256xf32, #tpu.memory_space<vmem>>, vector<1x256xf32>,
      %c3 = arith.constant 3 : index
      %c0_33 = arith.constant 0 : index
      %51 = vector.load %arg8[%c3, %c0_33] : memref<16x256xf32, #tpu.memory_space<vmem>>, vector<1x256xf32>
      tpu.vector_store %arg8[%c3, %c0_33], %18 {strides = array<i32>} : memref<16x256xf32, #tpu.memory_space<vmem>>, vector<1x256xf32>,
      %c255_i32 = arith.constant 255 : i32
      %52 = tpu.dynamic_rotate %18 by %c255_i32 dim 1 : vector<1x256xf32>, i32 -> vector<1x256xf32>
      %c-1_i32 = arith.constant -1 : i32
      %53 = vector.broadcast %c-1_i32 : i32 to vector<1x256xi32>
      %54 = arith.cmpi sge, %22, %53 : vector<1x256xi32>
      %c15_i32 = arith.constant 15 : i32
      %55 = vector.broadcast %c15_i32 : i32 to vector<1x256xi32>
      %56 = arith.cmpi slt, %22, %55 : vector<1x256xi32>
      %57 = arith.andi %54, %56 : vector<1x256xi1>
      %cst_34 = arith.constant 0.000000e+00 : f32
      %58 = vector.broadcast %cst_34 : f32 to vector<1x256xf32>
      %59 = arith.select %57, %52, %58 : vector<1x256xi1>, vector<1x256xf32>
      %c4 = arith.constant 4 : index
      %c0_35 = arith.constant 0 : index
      %60 = vector.load %arg8[%c4, %c0_35] : memref<16x256xf32, #tpu.memory_space<vmem>>, vector<1x256xf32>
      tpu.vector_store %arg8[%c4, %c0_35], %59 {strides = array<i32>} : memref<16x256xf32, #tpu.memory_space<vmem>>, vector<1x256xf32>,
      %c254_i32 = arith.constant 254 : i32
      %61 = tpu.dynamic_rotate %18 by %c254_i32 dim 1 : vector<1x256xf32>, i32 -> vector<1x256xf32>
      %c-2_i32 = arith.constant -2 : i32
      %62 = vector.broadcast %c-2_i32 : i32 to vector<1x256xi32>
      %63 = arith.cmpi sge, %22, %62 : vector<1x256xi32>
      %c14_i32 = arith.constant 14 : i32
      %64 = vector.broadcast %c14_i32 : i32 to vector<1x256xi32>
      %65 = arith.cmpi slt, %22, %64 : vector<1x256xi32>
      %66 = arith.andi %63, %65 : vector<1x256xi1>
      %cst_36 = arith.constant 0.000000e+00 : f32
      %67 = vector.broadcast %cst_36 : f32 to vector<1x256xf32>
      %68 = arith.select %66, %61, %67 : vector<1x256xi1>, vector<1x256xf32>
      %c5 = arith.constant 5 : index
      %c0_37 = arith.constant 0 : index
      %69 = vector.load %arg8[%c5, %c0_37] : memref<16x256xf32, #tpu.memory_space<vmem>>, vector<1x256xf32>
      tpu.vector_store %arg8[%c5, %c0_37], %68 {strides = array<i32>} : memref<16x256xf32, #tpu.memory_space<vmem>>, vector<1x256xf32>,
      %c253_i32 = arith.constant 253 : i32
      %70 = tpu.dynamic_rotate %18 by %c253_i32 dim 1 : vector<1x256xf32>, i32 -> vector<1x256xf32>
      %c-3_i32 = arith.constant -3 : i32
      %71 = vector.broadcast %c-3_i32 : i32 to vector<1x256xi32>
      %72 = arith.cmpi sge, %22, %71 : vector<1x256xi32>
      %c13_i32 = arith.constant 13 : i32
      %73 = vector.broadcast %c13_i32 : i32 to vector<1x256xi32>
      %74 = arith.cmpi slt, %22, %73 : vector<1x256xi32>
      %75 = arith.andi %72, %74 : vector<1x256xi1>
      %cst_38 = arith.constant 0.000000e+00 : f32
      %76 = vector.broadcast %cst_38 : f32 to vector<1x256xf32>
      %77 = arith.select %75, %70, %76 : vector<1x256xi1>, vector<1x256xf32>
      %c6 = arith.constant 6 : index
      %c0_39 = arith.constant 0 : index
      %78 = vector.load %arg8[%c6, %c0_39] : memref<16x256xf32, #tpu.memory_space<vmem>>, vector<1x256xf32>
      tpu.vector_store %arg8[%c6, %c0_39], %77 {strides = array<i32>} : memref<16x256xf32, #tpu.memory_space<vmem>>, vector<1x256xf32>,
      %cst_40 = arith.constant 0.000000e+00 : f32
      %79 = vector.broadcast %cst_40 : f32 to vector<1x256xf32>
      %c7 = arith.constant 7 : index
      %c0_41 = arith.constant 0 : index
      %80 = vector.load %arg8[%c7, %c0_41] : memref<16x256xf32, #tpu.memory_space<vmem>>, vector<1x256xf32>
      tpu.vector_store %arg8[%c7, %c0_41], %79 {strides = array<i32>} : memref<16x256xf32, #tpu.memory_space<vmem>>, vector<1x256xf32>,
      %c3_i32_42 = arith.constant 3 : i32
      %81 = tpu.dynamic_rotate %21 by %c3_i32_42 dim 1 : vector<1x256xf32>, i32 -> vector<1x256xf32>
      %c3_i32_43 = arith.constant 3 : i32
      %82 = vector.broadcast %c3_i32_43 : i32 to vector<1x256xi32>
      %83 = arith.cmpi sge, %22, %82 : vector<1x256xi32>
      %c19_i32_44 = arith.constant 19 : i32
      %84 = vector.broadcast %c19_i32_44 : i32 to vector<1x256xi32>
      %85 = arith.cmpi slt, %22, %84 : vector<1x256xi32>
      %86 = arith.andi %83, %85 : vector<1x256xi1>
      %cst_45 = arith.constant 0.000000e+00 : f32
      %87 = vector.broadcast %cst_45 : f32 to vector<1x256xf32>
      %88 = arith.select %86, %81, %87 : vector<1x256xi1>, vector<1x256xf32>
      %c8 = arith.constant 8 : index
      %c0_46 = arith.constant 0 : index
      %89 = vector.load %arg8[%c8, %c0_46] : memref<16x256xf32, #tpu.memory_space<vmem>>, vector<1x256xf32>
      tpu.vector_store %arg8[%c8, %c0_46], %88 {strides = array<i32>} : memref<16x256xf32, #tpu.memory_space<vmem>>, vector<1x256xf32>,
      %c2_i32_47 = arith.constant 2 : i32
      %90 = tpu.dynamic_rotate %21 by %c2_i32_47 dim 1 : vector<1x256xf32>, i32 -> vector<1x256xf32>
      %c2_i32_48 = arith.constant 2 : i32
      %91 = vector.broadcast %c2_i32_48 : i32 to vector<1x256xi32>
      %92 = arith.cmpi sge, %22, %91 : vector<1x256xi32>
      %c18_i32_49 = arith.constant 18 : i32
      %93 = vector.broadcast %c18_i32_49 : i32 to vector<1x256xi32>
      %94 = arith.cmpi slt, %22, %93 : vector<1x256xi32>
      %95 = arith.andi %92, %94 : vector<1x256xi1>
      %cst_50 = arith.constant 0.000000e+00 : f32
      %96 = vector.broadcast %cst_50 : f32 to vector<1x256xf32>
      %97 = arith.select %95, %90, %96 : vector<1x256xi1>, vector<1x256xf32>
      %c9 = arith.constant 9 : index
      %c0_51 = arith.constant 0 : index
      %98 = vector.load %arg8[%c9, %c0_51] : memref<16x256xf32, #tpu.memory_space<vmem>>, vector<1x256xf32>
      tpu.vector_store %arg8[%c9, %c0_51], %97 {strides = array<i32>} : memref<16x256xf32, #tpu.memory_space<vmem>>, vector<1x256xf32>,
      %c1_i32_52 = arith.constant 1 : i32
      %99 = tpu.dynamic_rotate %21 by %c1_i32_52 dim 1 : vector<1x256xf32>, i32 -> vector<1x256xf32>
      %c1_i32_53 = arith.constant 1 : i32
      %100 = vector.broadcast %c1_i32_53 : i32 to vector<1x256xi32>
      %101 = arith.cmpi sge, %22, %100 : vector<1x256xi32>
      %c17_i32_54 = arith.constant 17 : i32
      %102 = vector.broadcast %c17_i32_54 : i32 to vector<1x256xi32>
      %103 = arith.cmpi slt, %22, %102 : vector<1x256xi32>
      %104 = arith.andi %101, %103 : vector<1x256xi1>
      %cst_55 = arith.constant 0.000000e+00 : f32
      %105 = vector.broadcast %cst_55 : f32 to vector<1x256xf32>
      %106 = arith.select %104, %99, %105 : vector<1x256xi1>, vector<1x256xf32>
      %c10 = arith.constant 10 : index
      %c0_56 = arith.constant 0 : index
      %107 = vector.load %arg8[%c10, %c0_56] : memref<16x256xf32, #tpu.memory_space<vmem>>, vector<1x256xf32>
      tpu.vector_store %arg8[%c10, %c0_56], %106 {strides = array<i32>} : memref<16x256xf32, #tpu.memory_space<vmem>>, vector<1x256xf32>,
      %c11 = arith.constant 11 : index
      %c0_57 = arith.constant 0 : index
      %108 = vector.load %arg8[%c11, %c0_57] : memref<16x256xf32, #tpu.memory_space<vmem>>, vector<1x256xf32>
      tpu.vector_store %arg8[%c11, %c0_57], %21 {strides = array<i32>} : memref<16x256xf32, #tpu.memory_space<vmem>>, vector<1x256xf32>,
      %c255_i32_58 = arith.constant 255 : i32
      %109 = tpu.dynamic_rotate %21 by %c255_i32_58 dim 1 : vector<1x256xf32>, i32 -> vector<1x256xf32>
      %c-1_i32_59 = arith.constant -1 : i32
      %110 = vector.broadcast %c-1_i32_59 : i32 to vector<1x256xi32>
      %111 = arith.cmpi sge, %22, %110 : vector<1x256xi32>
      %c15_i32_60 = arith.constant 15 : i32
      %112 = vector.broadcast %c15_i32_60 : i32 to vector<1x256xi32>
      %113 = arith.cmpi slt, %22, %112 : vector<1x256xi32>
      %114 = arith.andi %111, %113 : vector<1x256xi1>
      %cst_61 = arith.constant 0.000000e+00 : f32
      %115 = vector.broadcast %cst_61 : f32 to vector<1x256xf32>
      %116 = arith.select %114, %109, %115 : vector<1x256xi1>, vector<1x256xf32>
      %c12 = arith.constant 12 : index
      %c0_62 = arith.constant 0 : index
      %117 = vector.load %arg8[%c12, %c0_62] : memref<16x256xf32, #tpu.memory_space<vmem>>, vector<1x256xf32>
      tpu.vector_store %arg8[%c12, %c0_62], %116 {strides = array<i32>} : memref<16x256xf32, #tpu.memory_space<vmem>>, vector<1x256xf32>,
      %c254_i32_63 = arith.constant 254 : i32
      %118 = tpu.dynamic_rotate %21 by %c254_i32_63 dim 1 : vector<1x256xf32>, i32 -> vector<1x256xf32>
      %c-2_i32_64 = arith.constant -2 : i32
      %119 = vector.broadcast %c-2_i32_64 : i32 to vector<1x256xi32>
      %120 = arith.cmpi sge, %22, %119 : vector<1x256xi32>
      %c14_i32_65 = arith.constant 14 : i32
      %121 = vector.broadcast %c14_i32_65 : i32 to vector<1x256xi32>
      %122 = arith.cmpi slt, %22, %121 : vector<1x256xi32>
      %123 = arith.andi %120, %122 : vector<1x256xi1>
      %cst_66 = arith.constant 0.000000e+00 : f32
      %124 = vector.broadcast %cst_66 : f32 to vector<1x256xf32>
      %125 = arith.select %123, %118, %124 : vector<1x256xi1>, vector<1x256xf32>
      %c13 = arith.constant 13 : index
      %c0_67 = arith.constant 0 : index
      %126 = vector.load %arg8[%c13, %c0_67] : memref<16x256xf32, #tpu.memory_space<vmem>>, vector<1x256xf32>
      tpu.vector_store %arg8[%c13, %c0_67], %125 {strides = array<i32>} : memref<16x256xf32, #tpu.memory_space<vmem>>, vector<1x256xf32>,
      %c253_i32_68 = arith.constant 253 : i32
      %127 = tpu.dynamic_rotate %21 by %c253_i32_68 dim 1 : vector<1x256xf32>, i32 -> vector<1x256xf32>
      %c-3_i32_69 = arith.constant -3 : i32
      %128 = vector.broadcast %c-3_i32_69 : i32 to vector<1x256xi32>
      %129 = arith.cmpi sge, %22, %128 : vector<1x256xi32>
      %c13_i32_70 = arith.constant 13 : i32
      %130 = vector.broadcast %c13_i32_70 : i32 to vector<1x256xi32>
      %131 = arith.cmpi slt, %22, %130 : vector<1x256xi32>
      %132 = arith.andi %129, %131 : vector<1x256xi1>
      %cst_71 = arith.constant 0.000000e+00 : f32
      %133 = vector.broadcast %cst_71 : f32 to vector<1x256xf32>
      %134 = arith.select %132, %127, %133 : vector<1x256xi1>, vector<1x256xf32>
      %c14 = arith.constant 14 : index
      %c0_72 = arith.constant 0 : index
      %135 = vector.load %arg8[%c14, %c0_72] : memref<16x256xf32, #tpu.memory_space<vmem>>, vector<1x256xf32>
      tpu.vector_store %arg8[%c14, %c0_72], %134 {strides = array<i32>} : memref<16x256xf32, #tpu.memory_space<vmem>>, vector<1x256xf32>,
      %cst_73 = arith.constant 0.000000e+00 : f32
      %136 = vector.broadcast %cst_73 : f32 to vector<1x256xf32>
      %c15 = arith.constant 15 : index
      %c0_74 = arith.constant 0 : index
      %137 = vector.load %arg8[%c15, %c0_74] : memref<16x256xf32, #tpu.memory_space<vmem>>, vector<1x256xf32>
      tpu.vector_store %arg8[%c15, %c0_74], %136 {strides = array<i32>} : memref<16x256xf32, #tpu.memory_space<vmem>>, vector<1x256xf32>,
      %c0_75 = arith.constant 0 : index
      %c0_76 = arith.constant 0 : index
      %138 = vector.load %arg8[%c0_75, %c0_76] : memref<16x256xf32, #tpu.memory_space<vmem>>, vector<16x256xf32>
      %c0_77 = arith.constant 0 : index
      %c0_78 = arith.constant 0 : index
      %139 = vector.load %arg3[%c0_77, %c0_78] : memref<16x128xf32, #tpu.memory_space<vmem>>, vector<16x128xf32>
      %cst_79 = arith.constant 0.000000e+00 : f32
      %140 = vector.broadcast %cst_79 : f32 to vector<1x256xf32>
      %141 = vector.extract_strided_slice %139 {offsets = [0, 0], sizes = [16, 1], strides = [1, 1]} : vector<16x128xf32> to vector<16x1xf32>
      %142 = vector.broadcast %141 : vector<16x1xf32> to vector<16x256xf32>
      %143 = arith.mulf %138, %142 : vector<16x256xf32>
      %cst_80 = arith.constant dense<0.000000e+00> : vector<256xf32>
      %144 = vector.multi_reduction <add>, %143, %cst_80 [0] : vector<16x256xf32> to vector<256xf32>
      %145 = vector.shape_cast %144 : vector<256xf32> to vector<1x256xf32>
      %c48_i32 = arith.constant 48 : i32
      %146 = tpu.dynamic_rotate %145 by %c48_i32 dim 1 : vector<1x256xf32>, i32 -> vector<1x256xf32>
      %c3_i32_81 = arith.constant 3 : i32
      %147 = vector.broadcast %c3_i32_81 : i32 to vector<1x256xi32>
      %148 = arith.cmpi sge, %23, %147 : vector<1x256xi32>
      %c19_i32_82 = arith.constant 19 : i32
      %149 = vector.broadcast %c19_i32_82 : i32 to vector<1x256xi32>
      %150 = arith.cmpi slt, %23, %149 : vector<1x256xi32>
      %151 = arith.andi %148, %150 : vector<1x256xi1>
      %cst_83 = arith.constant 0.000000e+00 : f32
      %152 = vector.broadcast %cst_83 : f32 to vector<1x256xf32>
      %153 = arith.select %151, %146, %152 : vector<1x256xi1>, vector<1x256xf32>
      %154 = arith.addf %140, %153 : vector<1x256xf32>
      %155 = vector.extract_strided_slice %139 {offsets = [0, 1], sizes = [16, 1], strides = [1, 1]} : vector<16x128xf32> to vector<16x1xf32>
      %156 = vector.broadcast %155 : vector<16x1xf32> to vector<16x256xf32>
      %157 = arith.mulf %138, %156 : vector<16x256xf32>
      %cst_84 = arith.constant dense<0.000000e+00> : vector<256xf32>
      %158 = vector.multi_reduction <add>, %157, %cst_84 [0] : vector<16x256xf32> to vector<256xf32>
      %159 = vector.shape_cast %158 : vector<256xf32> to vector<1x256xf32>
      %c32_i32 = arith.constant 32 : i32
      %160 = tpu.dynamic_rotate %159 by %c32_i32 dim 1 : vector<1x256xf32>, i32 -> vector<1x256xf32>
      %c2_i32_85 = arith.constant 2 : i32
      %161 = vector.broadcast %c2_i32_85 : i32 to vector<1x256xi32>
      %162 = arith.cmpi sge, %23, %161 : vector<1x256xi32>
      %c18_i32_86 = arith.constant 18 : i32
      %163 = vector.broadcast %c18_i32_86 : i32 to vector<1x256xi32>
      %164 = arith.cmpi slt, %23, %163 : vector<1x256xi32>
      %165 = arith.andi %162, %164 : vector<1x256xi1>
      %cst_87 = arith.constant 0.000000e+00 : f32
      %166 = vector.broadcast %cst_87 : f32 to vector<1x256xf32>
      %167 = arith.select %165, %160, %166 : vector<1x256xi1>, vector<1x256xf32>
      %168 = arith.addf %154, %167 : vector<1x256xf32>
      %169 = vector.extract_strided_slice %139 {offsets = [0, 2], sizes = [16, 1], strides = [1, 1]} : vector<16x128xf32> to vector<16x1xf32>
      %170 = vector.broadcast %169 : vector<16x1xf32> to vector<16x256xf32>
      %171 = arith.mulf %138, %170 : vector<16x256xf32>
      %cst_88 = arith.constant dense<0.000000e+00> : vector<256xf32>
      %172 = vector.multi_reduction <add>, %171, %cst_88 [0] : vector<16x256xf32> to vector<256xf32>
      %173 = vector.shape_cast %172 : vector<256xf32> to vector<1x256xf32>
      %c16_i32 = arith.constant 16 : i32
      %174 = tpu.dynamic_rotate %173 by %c16_i32 dim 1 : vector<1x256xf32>, i32 -> vector<1x256xf32>
      %c1_i32_89 = arith.constant 1 : i32
      %175 = vector.broadcast %c1_i32_89 : i32 to vector<1x256xi32>
      %176 = arith.cmpi sge, %23, %175 : vector<1x256xi32>
      %c17_i32_90 = arith.constant 17 : i32
      %177 = vector.broadcast %c17_i32_90 : i32 to vector<1x256xi32>
      %178 = arith.cmpi slt, %23, %177 : vector<1x256xi32>
      %179 = arith.andi %176, %178 : vector<1x256xi1>
      %cst_91 = arith.constant 0.000000e+00 : f32
      %180 = vector.broadcast %cst_91 : f32 to vector<1x256xf32>
      %181 = arith.select %179, %174, %180 : vector<1x256xi1>, vector<1x256xf32>
      %182 = arith.addf %168, %181 : vector<1x256xf32>
      %183 = vector.extract_strided_slice %139 {offsets = [0, 3], sizes = [16, 1], strides = [1, 1]} : vector<16x128xf32> to vector<16x1xf32>
      %184 = vector.broadcast %183 : vector<16x1xf32> to vector<16x256xf32>
      %185 = arith.mulf %138, %184 : vector<16x256xf32>
      %cst_92 = arith.constant dense<0.000000e+00> : vector<256xf32>
      %186 = vector.multi_reduction <add>, %185, %cst_92 [0] : vector<16x256xf32> to vector<256xf32>
      %187 = vector.shape_cast %186 : vector<256xf32> to vector<1x256xf32>
      %188 = arith.addf %182, %187 : vector<1x256xf32>
      %189 = vector.extract_strided_slice %139 {offsets = [0, 4], sizes = [16, 1], strides = [1, 1]} : vector<16x128xf32> to vector<16x1xf32>
      %190 = vector.broadcast %189 : vector<16x1xf32> to vector<16x256xf32>
      %191 = arith.mulf %138, %190 : vector<16x256xf32>
      %cst_93 = arith.constant dense<0.000000e+00> : vector<256xf32>
      %192 = vector.multi_reduction <add>, %191, %cst_93 [0] : vector<16x256xf32> to vector<256xf32>
      %193 = vector.shape_cast %192 : vector<256xf32> to vector<1x256xf32>
      %c240_i32 = arith.constant 240 : i32
      %194 = tpu.dynamic_rotate %193 by %c240_i32 dim 1 : vector<1x256xf32>, i32 -> vector<1x256xf32>
      %c-1_i32_94 = arith.constant -1 : i32
      %195 = vector.broadcast %c-1_i32_94 : i32 to vector<1x256xi32>
      %196 = arith.cmpi sge, %23, %195 : vector<1x256xi32>
      %c15_i32_95 = arith.constant 15 : i32
      %197 = vector.broadcast %c15_i32_95 : i32 to vector<1x256xi32>
      %198 = arith.cmpi slt, %23, %197 : vector<1x256xi32>
      %199 = arith.andi %196, %198 : vector<1x256xi1>
      %cst_96 = arith.constant 0.000000e+00 : f32
      %200 = vector.broadcast %cst_96 : f32 to vector<1x256xf32>
      %201 = arith.select %199, %194, %200 : vector<1x256xi1>, vector<1x256xf32>
      %202 = arith.addf %188, %201 : vector<1x256xf32>
      %203 = vector.extract_strided_slice %139 {offsets = [0, 5], sizes = [16, 1], strides = [1, 1]} : vector<16x128xf32> to vector<16x1xf32>
      %204 = vector.broadcast %203 : vector<16x1xf32> to vector<16x256xf32>
      %205 = arith.mulf %138, %204 : vector<16x256xf32>
      %cst_97 = arith.constant dense<0.000000e+00> : vector<256xf32>
      %206 = vector.multi_reduction <add>, %205, %cst_97 [0] : vector<16x256xf32> to vector<256xf32>
      %207 = vector.shape_cast %206 : vector<256xf32> to vector<1x256xf32>
      %c224_i32 = arith.constant 224 : i32
      %208 = tpu.dynamic_rotate %207 by %c224_i32 dim 1 : vector<1x256xf32>, i32 -> vector<1x256xf32>
      %c-2_i32_98 = arith.constant -2 : i32
      %209 = vector.broadcast %c-2_i32_98 : i32 to vector<1x256xi32>
      %210 = arith.cmpi sge, %23, %209 : vector<1x256xi32>
      %c14_i32_99 = arith.constant 14 : i32
      %211 = vector.broadcast %c14_i32_99 : i32 to vector<1x256xi32>
      %212 = arith.cmpi slt, %23, %211 : vector<1x256xi32>
      %213 = arith.andi %210, %212 : vector<1x256xi1>
      %cst_100 = arith.constant 0.000000e+00 : f32
      %214 = vector.broadcast %cst_100 : f32 to vector<1x256xf32>
      %215 = arith.select %213, %208, %214 : vector<1x256xi1>, vector<1x256xf32>
      %216 = arith.addf %202, %215 : vector<1x256xf32>
      %217 = vector.extract_strided_slice %139 {offsets = [0, 6], sizes = [16, 1], strides = [1, 1]} : vector<16x128xf32> to vector<16x1xf32>
      %218 = vector.broadcast %217 : vector<16x1xf32> to vector<16x256xf32>
      %219 = arith.mulf %138, %218 : vector<16x256xf32>
      %cst_101 = arith.constant dense<0.000000e+00> : vector<256xf32>
      %220 = vector.multi_reduction <add>, %219, %cst_101 [0] : vector<16x256xf32> to vector<256xf32>
      %221 = vector.shape_cast %220 : vector<256xf32> to vector<1x256xf32>
      %c208_i32 = arith.constant 208 : i32
      %222 = tpu.dynamic_rotate %221 by %c208_i32 dim 1 : vector<1x256xf32>, i32 -> vector<1x256xf32>
      %c-3_i32_102 = arith.constant -3 : i32
      %223 = vector.broadcast %c-3_i32_102 : i32 to vector<1x256xi32>
      %224 = arith.cmpi sge, %23, %223 : vector<1x256xi32>
      %c13_i32_103 = arith.constant 13 : i32
      %225 = vector.broadcast %c13_i32_103 : i32 to vector<1x256xi32>
      %226 = arith.cmpi slt, %23, %225 : vector<1x256xi32>
      %227 = arith.andi %224, %226 : vector<1x256xi1>
      %cst_104 = arith.constant 0.000000e+00 : f32
      %228 = vector.broadcast %cst_104 : f32 to vector<1x256xf32>
      %229 = arith.select %227, %222, %228 : vector<1x256xi1>, vector<1x256xf32>
      %230 = arith.addf %216, %229 : vector<1x256xf32>
      %231 = arith.negf %230 : vector<1x256xf32>
      %232 = math.exp %231 : vector<1x256xf32>
      %cst_105 = arith.constant 1.000000e+00 : f32
      %233 = vector.broadcast %cst_105 : f32 to vector<1x256xf32>
      %234 = arith.addf %233, %232 : vector<1x256xf32>
      %235 = arith.divf %233, %234 : vector<1x256xf32>
      %c0_106 = arith.constant 0 : index
      %c0_107 = arith.constant 0 : index
      %c0_108 = arith.constant 0 : index
      %236 = vector.load %arg5[%c0_106, %c0_107, %c0_108] : memref<1x1x256xf32, #tpu.memory_space<vmem>>, vector<1x1x256xf32>
      %237 = vector.shape_cast %236 : vector<1x1x256xf32> to vector<1x256xf32>
      %238 = vector.shape_cast %235 : vector<1x256xf32> to vector<1x1x256xf32>
      tpu.vector_store %arg5[%c0_106, %c0_107, %c0_108], %238 {strides = array<i32>} : memref<1x1x256xf32, #tpu.memory_space<vmem>>, vector<1x1x256xf32>,
    } else {
    }
    return
  }
  func.func @transform_0(%arg0: i32, %arg1: i32) -> (i32, i32) {
    %c0_i32 = arith.constant 0 : i32
    %c0_i32_0 = arith.constant 0 : i32
    %c0_i32_1 = arith.constant 0 : i32
    return %c0_i32, %c0_i32_0 : i32, i32
  }
  func.func @transform_1(%arg0: i32, %arg1: i32) -> (i32, i32) {
    %c0_i32 = arith.constant 0 : i32
    %c0_i32_0 = arith.constant 0 : i32
    %c0_i32_1 = arith.constant 0 : i32
    return %c0_i32, %c0_i32_0 : i32, i32
  }
  func.func @transform_2(%arg0: i32, %arg1: i32) -> (i32, i32, i32) {
    %c0_i32 = arith.constant 0 : i32
    %c0_i32_0 = arith.constant 0 : i32
    return %arg0, %arg1, %c0_i32 : i32, i32, i32
  }
  func.func @transform_3(%arg0: i32, %arg1: i32) -> (i32, i32, i32) {
    %c0_i32 = arith.constant 0 : i32
    %c0_i32_0 = arith.constant 0 : i32
    %c0_i32_1 = arith.constant 0 : i32
    return %arg0, %c0_i32, %c0_i32_0 : i32, i32, i32
  }
}

</mosaic_0001>

<bundles_post_ra>
// kernel: tpu_custom_call.1
= control target key start
LH: loop header
LB: loop body
LE: loop exit
PB: predicated region body
PF: predicated region fallthrough
CT: control target
= control target key end

     0   :  { %8 = vsyncpa [#allocation6], 0  ;;  %s1790_s0 = inlined_call_operand.hbm [shape: s32[2,256], index: 0, kind: input, shape index: {}]   ;;  %s1791_s1 = inlined_call_operand.hbm [shape: f32[16,128], index: 1, kind: input, shape index: {}]   ;;  %s1792_s2 = inlined_call_operand.hbm [shape: f32[2,4,256], index: 2, kind: input, shape index: {}]   ;;  %s1793_s3 = inlined_call_operand.hbm [shape: f32[2,1,256], index: 3, kind: output, shape index: {}]  }
   0x1   :  { %9 = vsyncpa [#allocation9], 0 }
   0x2   :  { %10 = vsyncpa [#allocation7], 0 }
   0x3   :  { %12 = vsyncpa [#allocation7 + $0x1], 0  ;;  %s1333_s12 = smov 0   ;;  %s1335_s13 = smov 0  }
   0x4   :  { %s1337_s14 = smov 0   ;;  %s1339_s15 = smov 0  }
   0x5   :  { %s1341_s16 = smov 0   ;;  %s1343_s17 = smov 0  }
   0x6 LB: > { %s1364_s18 = sadd.s32 4294967295, %s1287_s17   ;;  %s965_s19 = sadd.s32 4294967294, %s1287_s17   ;;  %s1287_s17 = sphi %s1343_s17, %s18_s17   ;;  %s1283_s16 = sphi %s1341_s16, %s1825_s16   ;;  %s1279_s15 = sphi %s1339_s15, %s1824_s15   ;;  %s1275_s14 = sphi %s1337_s14, %s1823_s14   ;;  %s1271_s13 = sphi %s1335_s13, %s1822_s13   ;;  %s1267_s12 = sphi %s1333_s12, %s1821_s12  }
   0x7   : > { %p94_p0 = scmp.ne.s32.totalorder %s1271_s13, %s1267_s12  ;;  %p95_p1 = scmp.eq.s32.totalorder %s1364_s18, 0 }
   0x8   : > { %p118_p2 = scmp.eq.s32.totalorder %s1364_s18, 1  ;;  %p124_p3 = scmp.eq.s32.totalorder %s965_s19, 1 }
   0x9   : > { %p1373_p4 = por %p95_p1, %p94_p0  ;;  %p966_p5 = scmp.ge.s32.totalorder %s1287_s17, 1 }
   0xa   : > { %p1378_p6 = por %p124_p3, %p94_p0  ;;  %p131_p7 = scmp.lt.s32.totalorder %s1287_s17, 3 }
   0xb   : > { %s143_s24 = sshll.u32 %s1790_s0, 4  ;;  %p969_p9 = scmp.ge.s32.totalorder %s1287_s17, 2  ;;  %s144_s24 = int_to_ptr.hbm [resolvable:$true] %s143_s24 }
   0xc   : > { %p1386_p8 = pnand %p966_p5, %p131_p7  ;;  %s1289_s26 = smov [#allocation5]  }
   0xd   : > { %s145_s27 = sshll.u32 %s1289_s26, 4  ;;  %s154_s30 = sshll.u32 %s1791_s1, 4  ;;  %s146_s27 = int_to_ptr.vmem [resolvable:$true] %s145_s27  ;;  %s155_s30 = int_to_ptr.hbm [resolvable:$true] %s154_s30 }
   0xe   : > { %p996_p10 = pneg %p1386_p8  ;;  %s1290_s4 = smov [#allocation8]  }
   0xf   : > { %s156_s5 = sshll.u32 %s1290_s4, 4  ;;  %s1291_s6 = smov 128   ;;  %s157_s5 = int_to_ptr.vmem [resolvable:$true] %s156_s5 }
  0x10   : > { %p997_p11 = pnand %p996_p10, %p95_p1  ;;  %s1292_s7 = smov 8  }
  0x11   : > { %s30_s8 = sadd.s32 1, %s1283_s16  ;;  %s81_s9 = sadd.s32 1, %s1275_s14 }
  0x12   : > { %999 = dma.hbm_to_vmem [thread:$0]  (!%p997_p11), %s144_s24, 64, %s146_s27, [#allocation6]  }
  0x13   : > { %1002 = dma.hbm_to_vmem [thread:$0]  (!%p997_p11), %s155_s30, 256, %s157_s5, [#allocation9], %s1291_s6, %s1291_s6, %s1292_s7  }
  0x14   : > { %p32_p12 = scmp.ge.s32.totalorder %s30_s8, 2  ;;  %p88_p13 = scmp.ne.s32.totalorder %s1275_s14, %s1271_s13 }
  0x15   : > { %p89_p0 = scmp.eq.s32.totalorder %s1287_s17, 0  ;;  %p1013_p3 = scmp.lt.s32.totalorder %s1287_s17, 2 }
  0x16   : > { %s1827_s8 = smov (%p32_p12, %s30_s8), 0  ;;  %p1412_p7 = por %p118_p2, %p88_p13 }
  0x17   : > { %p1406_p5 = por %p89_p0, %p88_p13  ;;  %s76_s19 = ssub.s32 %s1283_s16, %s1827_s8 }
  0x18   : > { %s170_s22 = sand.u32 1, %s1287_s17   ;;  %p79_p10 = scmp.eq.s32.totalorder %s76_s19, 0 }
  0x19   : > { %s172_s23 = sand.u32 1, %s1275_s14   ;;  %s983_s24 = sshll.u32 %s1283_s16, 3 }
  0x1a   : > { %s1422_s26 = scalar_select %p79_p10, %s1275_s14, %s81_s9  }
  0x1b   : > { %s970_s27 = sshll.u32 %s172_s23, 3  ;;  %s181_s30 = scalar_lea.hbm %s1792_s2, %s983_s24 }
  0x1c   : > { %s183_s4 = sshll.u32 %s181_s30, 4  ;;  %s174_s5 = scalar_lea.vmem [#allocation10], %s970_s27  ;;  %s184_s4 = int_to_ptr.hbm [resolvable:$true] %s183_s4 }
  0x1d   : > { %s185_s6 = sshll.u32 %s174_s5, 4  ;;  %p1004_p2 = pnand %p1013_p3, %p1406_p5  ;;  %s186_s6 = int_to_ptr.vmem [resolvable:$true] %s185_s6 }
  0x1e   : > { %s171_s7 = scalar_lea.sflag [#allocation6], %s170_s22  ;;  %194 = sbr.rel (%p1386_p8) target bundleno = 451 (0x1c3), region = 32 }
  0x1f   : > { %1006 = dma.hbm_to_vmem [thread:$0]  (!%p1004_p2), %s184_s4, 128, %s186_s6, %s171_s7  }
  0x23   : > { %1250 = dma.done.wait (%p95_p1), [#allocation6], 64  }
  0x24   : > { %1252 = vsyncadd (%p95_p1), [#allocation6], 4294967232 }
  0x25   : > { %1254 = dma.done.wait (%p95_p1), [#allocation9], 256  }
  0x26   : > { %1256 = vsyncadd (%p95_p1), [#allocation9], 4294967040  ;;  %s206_s9 = sand.u32 1, %s1364_s18   ;;  %s1443_s10 = sand.u32 1, %s1271_s13  }
  0x27   : > { %s976_s25 = sshll.u32 %s1443_s10, 3  ;;  %s207_s19 = scalar_lea.sflag [#allocation6], %s206_s9 }
  0x28   : > { %s210_s22 = scalar_lea.vmem [#allocation10], %s976_s25 }
  0x29   : > { %1258 = dma.done.wait (%p1373_p4), %s207_s19, 128  }
  0x2a   : > { %1260 = vsyncadd (%p1373_p4), %s207_s19, 4294967168  ;;  %v234_v0 = vld [vmem:[%s210_s22] sm:$0xff]  ;;  %vm257_vm0 = vcmask 1043456   ;;  %s1293_s18 = smov 1   ;;  %s1294_s20 = smov 2   ;;  %v1299_v33 = vmov 1   ;;  %v302_v42 = vlaneseq }
  0x2b   : > { %252 = vst [vmem:[#allocation1] ss:$2 sm:$0xff] %v234_v0  ;;  %s1295_s23 = smov 3   ;;  %s1296_s24 = smov 126   ;;  %1091 = vset.pattern.permute.xlu2 %v1299_v33  ;;  %v1300_v34 = vmov 0   ;;  %v534_v37 = vld [vmem:[#allocation8] sm:$0xff] }
  0x2c   : > { %s1297_s27 = smov 127   ;;  %s1298_s28 = smov 125   ;;  %1090 = vset.pattern.permute.xlu1 %v1300_v34  ;;  %1089 = vset.pattern.permute.xlu0 %v1300_v34  ;;  %v535_v38 = vld [vmem:[#allocation8 + $0x8] sm:$0xff]  ;;  %v1301_v39 = vmov 2   ;;  %v1302_v40 = vmov 4   ;;  %v1303_v41 = vmov 6  }
  0x2d   : > { %v1304_v44 = vmov 5   ;;  %v1502_v45 = vand.u32 127, %v302_v42  ;;  %v1504_v46 = vld [vmem:[#allocation5] ss:$2 sm:$0x3]  ;;  %vm313_vm4 = vcmask 1040384  }
  0x2e   : > { %vm349_vm2 = vcmp.ge.s32.totalorder %v1504_v46, 1  ;;  %vm350_vm3 = vcmp.lt.s32.totalorder %v1504_v46, 17  ;;  %v1305_v52 = vmov 3   ;;  %vm1517_vm6 = vcmp.lt.s32.totalorder %v302_v42, 256  ;;  %s1307_s29 = smov 48   ;;  %s1308_s30 = smov 32  }
  0x2f   : > { %vm346_vm1 = vcmp.lt.s32.totalorder %v1502_v45, 1  ;;  %vm1513_vm5 = vmand %vm349_vm2, %vm350_vm3  ;;  %v1306_v59 = vmov 0.0   ;;  %vm1795_vm7 = vcmp.lt.s32.totalorder %v1502_v45, 2  ;;  %vm330_vm8 = vcmp.ge.s32.totalorder %v1504_v46, 2  ;;  %s1309_s4 = smov 16   ;;  %s1310_s5 = smov 112  }
  0x30   : > { %427 = vst.msk [vmem:[#allocation4 + $0x7] ss:$8 sm:$0x3] %vm1517_vm6, %v1306_v59  ;;  %vm331_vm9 = vcmp.lt.s32.totalorder %v1504_v46, 18  ;;  %vm304_vm10 = vcmp.lt.s32.totalorder %v1502_v45, 3  ;;  %vm307_vm11 = vcmp.ge.s32.totalorder %v1504_v46, 3 }
  0x31   : > { %528 = vst.msk [vmem:[#allocation4 + $0x17] ss:$8 sm:$0x3] %vm1517_vm6, %v1306_v59  ;;  %vm308_vm12 = vcmp.lt.s32.totalorder %v1504_v46, 19  ;;  %vm1543_vm13 = vmand %vm330_vm8, %vm331_vm9  ;;  %vm1794_vm15 = vcmp.lt.s32.totalorder %v1502_v45, 127  ;;  %vm377_vm2 = vcmp.lt.s32.totalorder %v1504_v46, 15 }
  0x32   : > { %v253_v1 = vld.sshfl [vmem:[#allocation1] sm:$0xff pattern:$0x75316420]  ;;  %v254_v2 = vld.sshfl [vmem:[#allocation1 + $0x8] sm:$0xff pattern:$0x75316420]  ;;  %vm1551_vm14 = vmand %vm307_vm11, %vm308_vm12 }
  0x33   : > { %v258_v3 = vsel %vm257_vm0, %v253_v1, 0.0  ;;  %v265_v4 = vsel %vm257_vm0, %v254_v2, 0.0  ;;  %276 = vst [vmem:[#allocation1] ss:$2 sm:$0xff] %v234_v0  ;;  %vm411_vm8 = vcmp.lt.s32.totalorder %v1502_v45, 125  ;;  %vm414_vm9 = vcmp.ge.s32.totalorder %v1504_v46, 4294967293 }
  0x34   : > { %v259_v5 = vrot.slane %v258_v3, 4  ;;  %v266_v6 = vrot.slane %v265_v4, 4  ;;  %vm415_vm11 = vcmp.lt.s32.totalorder %v1504_v46, 13  ;;  %vm392_vm12 = vcmp.lt.s32.totalorder %v1502_v45, 126  ;;  %s1311_s6 = smov 96   ;;  %s1312_s7 = smov 80  }
  0x35   : > { %s977_s9 = sshll.u32 %s1443_s10, 1  ;;  %s980_s25 = sshll.u32 %s1279_s15, 1 }
  0x36   : > { %v260_v7 = vadd.f32 %v259_v5, %v258_v3  ;;  %v267_v8 = vadd.f32 %v266_v6, %v265_v4  ;;  %s849_s15 = scalar_lea.sflag [#allocation7], %s1443_s10 }
  0x38   : > { %v261_v9 = vrot.slane %v260_v7, 2  ;;  %v268_v10 = vrot.slane %v267_v8, 2 }
  0x3a   : > { %v262_v11 = vadd.f32 %v261_v9, %v260_v7  ;;  %v269_v12 = vadd.f32 %v268_v10, %v267_v8  ;;  %v277_v18 = vld.sshfl [vmem:[#allocation1] sm:$0xff pattern:$0x75316420]  ;;  %v278_v19 = vld.sshfl [vmem:[#allocation1 + $0x8] sm:$0xff pattern:$0x75316420] }
  0x3b   : > { %v281_v21 = vsel %vm257_vm0, %v277_v18, -inf  ;;  %v288_v22 = vsel %vm257_vm0, %v278_v19, -inf  ;;  %vm376_vm0 = vcmp.ge.s32.totalorder %v1504_v46, 4294967295 }
  0x3c   : > { %v263_v13 = vrot.slane %v262_v11, 1  ;;  %v270_v15 = vrot.slane %v269_v12, 1  ;;  %v282_v23 = vrot.slane %v281_v21, 4  ;;  %v289_v24 = vrot.slane %v288_v22, 4  ;;  %vm1572_vm3 = vmand %vm376_vm0, %vm377_vm2 }
  0x3d   : > { %vm395_vm0 = vcmp.ge.s32.totalorder %v1504_v46, 4294967294  ;;  %vm396_vm2 = vcmp.lt.s32.totalorder %v1504_v46, 14 }
  0x3e   : > { %v264_v14 = vadd.f32 %v263_v13, %v262_v11  ;;  %v271_v17 = vadd.f32 %v270_v15, %v269_v12  ;;  %v283_v25 = vmax.f32 %v281_v21, %v282_v23  ;;  %v290_v26 = vmax.f32 %v288_v22, %v289_v24 }
  0x40   : > { %v1452_v16 = vmul.f32 0.25, %v264_v14  ;;  %v1460_v20 = vmul.f32 0.25, %v271_v17  ;;  %v284_v27 = vrot.slane %v283_v25, 2  ;;  %v291_v28 = vrot.slane %v290_v26, 2 }
  0x42   : > { %342 = vrot.lane.b32.xlu2 %v1452_v16, %s1293_s18  ;;  %323 = vrot.lane.b32.xlu1 %v1452_v16, %s1294_s20  ;;  %v285_v29 = vmax.f32 %v283_v25, %v284_v27  ;;  %v292_v30 = vmax.f32 %v290_v26, %v291_v28  ;;  %v363_v56 = vrot.slane %v1460_v20, 7 }
  0x43   : > { %298 = vrot.lane.b32.xlu0 %v1452_v16, %s1295_s23 }
  0x44   : > { %v286_v31 = vrot.slane %v285_v29, 1  ;;  %v293_v32 = vrot.slane %v292_v30, 1  ;;  %v364_v57 = vsel %vm313_vm4, %v1452_v16, %v363_v56 }
  0x45   : > { %367 = vst.msk [vmem:[#allocation4 + $0x3] ss:$8 sm:$0x3] %vm1517_vm6, %v364_v57 }
  0x46   : > { %v1478_v35 = vmax.f32 %v285_v29, %v286_v31  ;;  %v1480_v36 = vmax.f32 %v292_v30, %v293_v32 }
  0x48   : > { %v476_v28 = vrot.slane %v1480_v36, 7 }
  0x4a   : > { %344 = vrot.lane.b32.xlu2 %v1460_v20, %s1293_s18  ;;  %325 = vrot.lane.b32.xlu1 %v1460_v20, %s1294_s20 }
  0x4b   : > { %300 = vrot.lane.b32.xlu0 %v1460_v20, %s1295_s23 }
  0x52   : > { %388 = vrot.lane.b32.xlu2 %v1452_v16, %s1296_s24  ;;  %371 = vrot.lane.b32.xlu1 %v1460_v20, %s1297_s27 }
  0x53   : > { %369 = vrot.lane.b32.xlu0 %v1452_v16, %s1297_s27 }
  0x5a   : > { %409 = vrot.lane.b32.xlu2 %v1460_v20, %s1298_s28  ;;  %407 = vrot.lane.b32.xlu1 %v1452_v16, %s1298_s28 }
  0x5b   : > { %390 = vrot.lane.b32.xlu0 %v1460_v20, %s1296_s24 }
  0x62   : > { %444 = vrot.lane.b32.xlu2 %v1478_v35, %s1294_s20  ;;  %431 = vrot.lane.b32.xlu1 %v1480_v36, %s1295_s23 }
  0x63   : > { %429 = vrot.lane.b32.xlu0 %v1478_v35, %s1295_s23 }
  0x6a   : > { %461 = vrot.lane.b32.xlu2 %v1480_v36, %s1293_s18  ;;  %459 = vrot.lane.b32.xlu1 %v1478_v35, %s1293_s18  ;;  %s859_s18 = scalar_lea.hbm %s1793_s3, %s980_s25 }
  0x6b   : > { %446 = vrot.lane.b32.xlu0 %v1480_v36, %s1294_s20  ;;  %s233_s20 = scalar_lea.vmem [#allocation11], %s977_s9 }
  0x6c   : > { %s861_s23 = sshll.u32 %s233_s20, 4  ;;  %s862_s23 = int_to_ptr.vmem [resolvable:$true] %s861_s23 }
  0x72   : > { %497 = vrot.lane.b32.xlu2 %v1478_v35, %s1296_s24  ;;  %484 = vrot.lane.b32.xlu1 %v1480_v36, %s1297_s27 }
  0x73   : > { %482 = vrot.lane.b32.xlu0 %v1478_v35, %s1297_s27 }
  0x7a   : > { %514 = vrot.lane.b32.xlu2 %v1480_v36, %s1298_s28  ;;  %512 = vrot.lane.b32.xlu1 %v1478_v35, %s1298_s28 }
  0x7b   : > { %499 = vrot.lane.b32.xlu0 %v1480_v36, %s1296_s24  ;;  %s863_s24 = sshll.u32 %s859_s18, 4  ;;  %s864_s24 = int_to_ptr.hbm [resolvable:$true] %s863_s24 }
  0x7c   : > { %s1211_s27 = sshra.s32 %s864_s24, 4  ;;  %s1212_s27 = int_to_ptr.hbm [resolvable:$true] %s1211_s27 }
  0x7d   : > { %s1213_s28 = scalar_lea.hbm %s1212_s27, 2  ;;  %p1218_p11 = scmp.lt.s32.totalorder %s1212_s27, %s1793_s3 }
  0x7e   : > { %p1214_p1 = scmp.ne.s32.totalorder %s1212_s27, %s1213_s28 }
  0x80   : > { %p1215_p4 = pnand %p1214_p1, %p1412_p7 }
  0x82   : > { %582 = vperm.xlu2 %1091, %v534_v37   ;;  %543 = vperm.xlu1 %1090, %v535_v38   ;;  %p1216_p8 = pneg %p1215_p4 }
  0x83   : > { %538 = vperm.xlu0 %1089, %v534_v37  }
  0x8a   : > { %1093 = vset.pattern.permute.xlu2 %v1301_v39  ;;  %1092 = vset.pattern.permute.xlu1 %v1299_v33 }
  0x8b   : > { %1094 = vset.pattern.permute.xlu0 %v1301_v39  ;;  %625 = vperm.xlu2 %1093, %v534_v37   ;;  %v477_v39 = vsel %vm313_vm4, %v1478_v35, %v476_v28 }
  0x8c   : > { %586 = vperm.xlu1 %1092, %v535_v38   ;;  %629 = vperm.xlu0 %1094, %v535_v38   ;;  %480 = vst.msk [vmem:[#allocation4 + $0x13] ss:$8 sm:$0x3] %vm1517_vm6, %v477_v39 }
  0x93   : > { %1096 = vset.pattern.permute.xlu2 %v1302_v40 }
  0x94   : > { %1095 = vset.pattern.permute.xlu1 %v1302_v40  ;;  %1099 = vset.pattern.permute.xlu0 %v1303_v41 }
  0x95   : > { %704 = vperm.xlu2 %1096, %v535_v38   ;;  %700 = vperm.xlu1 %1095, %v534_v37  }
  0x96   : > { %786 = vperm.xlu0 %1099, %v534_v37  }
  0x9c   : > { %v343_v43 = vpop.permute.xlu2 %342 }
  0x9d   : > { %1098 = vset.pattern.permute.xlu2 %v1304_v44  ;;  %1097 = vset.pattern.permute.xlu1 %v1304_v44 }
  0x9e   : > { %747 = vperm.xlu2 %1098, %v535_v38   ;;  %743 = vperm.xlu1 %1097, %v534_v37  }
  0xa4   : > { %v345_v47 = vpop.permute.xlu2 %344 }
  0xa5   : > { %v347_v48 = vsel %vm346_vm1, %v343_v43, %v345_v47  ;;  %v348_v49 = vsel %vm346_vm1, %v345_v47, %v343_v43 }
  0xa6   : > { %v354_v51 = vrot.slane %v347_v48, 7  ;;  %1101 = vset.pattern.permute.xlu2 %v1305_v52  ;;  %1100 = vset.pattern.permute.xlu1 %v1303_v41 }
  0xa7   : > { %668 = vperm.xlu2 %1101, %v534_v37   ;;  %790 = vperm.xlu1 %1100, %v535_v38  }
  0xa8   : > { %v355_v54 = vsel %vm313_vm4, %v348_v49, %v354_v51 }
  0xa9   : > { %v357_v55 = vsel %vm1513_vm5, %v355_v54, 0.0 }
  0xaa   : > { %359 = vst.msk [vmem:[#allocation4 + $0x2] ss:$8 sm:$0x3] %vm1517_vm6, %v357_v55 }
  0xac   : > { %v389_v60 = vpop.permute.xlu2 %388 }
  0xaf   : > { %1102 = vset.pattern.permute.xlu1 %v1305_v52 }
  0xb0   : > { %672 = vperm.xlu1 %1102, %v535_v38  }
  0xb4   : > { %v324_v58 = vpop.permute.xlu1 %323  ;;  %v410_v4 = vpop.permute.xlu2 %409 }
  0xb5   : > { %v299_v61 = vpop.permute.xlu0 %298 }
  0xbc   : > { %v326_v62 = vpop.permute.xlu1 %325  ;;  %v445_v19 = vpop.permute.xlu2 %444 }
  0xbd   : > { %v328_v63 = vsel %vm1795_vm7, %v324_v58, %v326_v62  ;;  %v301_v0 = vpop.permute.xlu0 %300  ;;  %v329_v5 = vsel %vm1795_vm7, %v326_v62, %v324_v58  ;;  %vm1600_vm7 = vmand %vm395_vm0, %vm396_vm2 }
  0xbe   : > { %v335_v2 = vrot.slane %v328_v63, 7  ;;  %v305_v3 = vsel %vm304_vm10, %v299_v61, %v301_v0  ;;  %v306_v9 = vsel %vm304_vm10, %v301_v0, %v299_v61 }
  0xbf   : > { %v312_v7 = vrot.slane %v305_v3, 7 }
  0xc0   : > { %v336_v8 = vsel %vm313_vm4, %v329_v5, %v335_v2 }
  0xc1   : > { %v338_v10 = vsel %vm1543_vm13, %v336_v8, 0.0  ;;  %v314_v11 = vsel %vm313_vm4, %v306_v9, %v312_v7 }
  0xc2   : > { %340 = vst.msk [vmem:[#allocation4 + $0x1] ss:$8 sm:$0x3] %vm1517_vm6, %v338_v10  ;;  %v316_v12 = vsel %vm1551_vm14, %v314_v11, 0.0 }
  0xc3   : > { %321 = vst.msk [vmem:[#allocation4] ss:$8 sm:$0x3] %vm1517_vm6, %v316_v12 }
  0xc4   : > { %v372_v13 = vpop.permute.xlu1 %371  ;;  %v462_v38 = vpop.permute.xlu2 %461 }
  0xc5   : > { %v370_v14 = vpop.permute.xlu0 %369 }
  0xc6   : > { %v375_v15 = vsel %vm1794_vm15, %v372_v13, %v370_v14  ;;  %v374_v18 = vsel %vm1794_vm15, %v370_v14, %v372_v13  ;;  %vm1591_vm15 = vmand %vm414_vm9, %vm415_vm11  ;;  %vm1815_vm9 = vcmp.lt.s32.totalorder %v1502_v45, 2 }
  0xc7   : > { %v381_v17 = vrot.slane %v375_v15, 7 }
  0xc9   : > { %v382_v20 = vsel %vm313_vm4, %v374_v18, %v381_v17 }
  0xca   : > { %v384_v21 = vsel %vm1572_vm3, %v382_v20, 0.0 }
  0xcb   : > { %386 = vst.msk [vmem:[#allocation4 + $0x4] ss:$8 sm:$0x3] %vm1517_vm6, %v384_v21 }
  0xcc   : > { %v408_v22 = vpop.permute.xlu1 %407  ;;  %v498_v48 = vpop.permute.xlu2 %497 }
  0xcd   : > { %v413_v23 = vsel %vm411_vm8, %v410_v4, %v408_v22  ;;  %v391_v24 = vpop.permute.xlu0 %390  ;;  %v412_v29 = vsel %vm411_vm8, %v408_v22, %v410_v4 }
  0xce   : > { %v419_v26 = vrot.slane %v413_v23, 7  ;;  %v394_v27 = vsel %vm392_vm12, %v391_v24, %v389_v60  ;;  %v393_v33 = vsel %vm392_vm12, %v389_v60, %v391_v24 }
  0xcf   : > { %v400_v31 = vrot.slane %v394_v27, 7 }
  0xd0   : > { %v420_v32 = vsel %vm313_vm4, %v412_v29, %v419_v26 }
  0xd1   : > { %v422_v34 = vsel %vm1591_vm15, %v420_v32, 0.0  ;;  %v401_v37 = vsel %vm313_vm4, %v393_v33, %v400_v31 }
  0xd2   : > { %424 = vst.msk [vmem:[#allocation4 + $0x6] ss:$8 sm:$0x3] %vm1517_vm6, %v422_v34  ;;  %v403_v36 = vsel %vm1600_vm7, %v401_v37, 0.0 }
  0xd3   : > { %405 = vst.msk [vmem:[#allocation4 + $0x5] ss:$8 sm:$0x3] %vm1517_vm6, %v403_v36 }
  0xd4   : > { %v432_v40 = vpop.permute.xlu1 %431  ;;  %v515_v2 = vpop.permute.xlu2 %514 }
  0xd5   : > { %v430_v41 = vpop.permute.xlu0 %429 }
  0xd6   : > { %v433_v42 = vsel %vm304_vm10, %v430_v41, %v432_v40  ;;  %v434_v44 = vsel %vm304_vm10, %v432_v40, %v430_v41  ;;  %vm1816_vm10 = vmmov %vm1815_vm9 }
  0xd7   : > { %v437_v43 = vrot.slane %v433_v42, 7 }
  0xd9   : > { %v438_v46 = vsel %vm313_vm4, %v434_v44, %v437_v43 }
  0xda   : > { %v440_v47 = vsel %vm1551_vm14, %v438_v46, 0.0  ;;  %v1674_v20 = vld [vmem:[#allocation4] sm:$0xff]  ;;  %v1676_v21 = vld [vmem:[#allocation4 + $0x8] sm:$0xff]  ;;  %vm654_vm14 = vcmp.lt.s32.totalorder %v1502_v45, 16 }
  0xdb   : > { %442 = vst.msk [vmem:[#allocation4 + $0x10] ss:$8 sm:$0x3] %vm1517_vm6, %v440_v47 }
  0xdc   : > { %v460_v35 = vpop.permute.xlu1 %459  ;;  %v583_v14 = vpop.permute.xlu2 %582 }
  0xdd   : > { %v463_v49 = vsel %vm346_vm1, %v460_v35, %v462_v38  ;;  %v447_v51 = vpop.permute.xlu0 %446  ;;  %v464_v55 = vsel %vm346_vm1, %v462_v38, %v460_v35  ;;  %vm1817_vm1 = vcmp.lt.s32.totalorder %v1502_v45, 127  ;;  %v589_v31 = vmul.f32 %v583_v14, %v1674_v20 }
  0xde   : > { %v467_v52 = vrot.slane %v463_v49, 7  ;;  %v448_v54 = vsel %vm1815_vm9, %v445_v19, %v447_v51  ;;  %v449_v58 = vsel %vm1816_vm10, %v447_v51, %v445_v19  ;;  %v590_v32 = vmul.f32 %v583_v14, %v1676_v21 }
  0xdf   : > { %v452_v56 = vrot.slane %v448_v54, 7  ;;  %vm729_vm9 = vcmp.lt.s32.totalorder %v1502_v45, 112 }
  0xe0   : > { %v468_v57 = vsel %vm313_vm4, %v464_v55, %v467_v52 }
  0xe1   : > { %v470_v59 = vsel %vm1513_vm5, %v468_v57, 0.0  ;;  %v453_v60 = vsel %vm313_vm4, %v449_v58, %v452_v56  ;;  %vm1818_vm5 = vmmov %vm1817_vm1 }
  0xe2   : > { %472 = vst.msk [vmem:[#allocation4 + $0x12] ss:$8 sm:$0x3] %vm1517_vm6, %v470_v59  ;;  %v455_v61 = vsel %vm1543_vm13, %v453_v60, 0.0  ;;  %vm568_vm13 = vcmp.lt.s32.totalorder %v1502_v45, 48 }
  0xe3   : > { %457 = vst.msk [vmem:[#allocation4 + $0x11] ss:$8 sm:$0x3] %vm1517_vm6, %v455_v61 }
  0xe4   : > { %v485_v62 = vpop.permute.xlu1 %484 }
  0xe5   : > { %v483_v63 = vpop.permute.xlu0 %482  ;;  %v626_v24 = vpop.permute.xlu2 %625 }
  0xe6   : > { %v487_v0 = vsel %vm1817_vm1, %v485_v62, %v483_v63  ;;  %v486_v50 = vsel %vm1818_vm5, %v483_v63, %v485_v62  ;;  %v632_v40 = vmul.f32 %v626_v24, %v1674_v20  ;;  %v633_v41 = vmul.f32 %v626_v24, %v1676_v21 }
  0xe7   : > { %v490_v3 = vrot.slane %v487_v0, 7  ;;  %vm772_vm5 = vcmp.lt.s32.totalorder %v1502_v45, 96 }
  0xe9   : > { %v491_v4 = vsel %vm313_vm4, %v486_v50, %v490_v3 }
  0xea   : > { %v493_v5 = vsel %vm1572_vm3, %v491_v4, 0.0 }
  0xeb   : > { %495 = vst.msk [vmem:[#allocation4 + $0x14] ss:$8 sm:$0x3] %vm1517_vm6, %v493_v5 }
  0xec   : > { %v513_v1 = vpop.permute.xlu1 %512 }
  0xed   : > { %v517_v6 = vsel %vm411_vm8, %v515_v2, %v513_v1  ;;  %v500_v7 = vpop.permute.xlu0 %499  ;;  %v516_v10 = vsel %vm411_vm8, %v513_v1, %v515_v2 }
  0xee   : > { %v520_v8 = vrot.slane %v517_v6, 7  ;;  %v502_v9 = vsel %vm392_vm12, %v500_v7, %v498_v48  ;;  %v501_v13 = vsel %vm392_vm12, %v498_v48, %v500_v7 }
  0xef   : > { %v505_v11 = vrot.slane %v502_v9, 7  ;;  %v705_v51 = vpop.permute.xlu2 %704 }
  0xf0   : > { %v521_v12 = vsel %vm313_vm4, %v516_v10, %v520_v8 }
  0xf1   : > { %v523_v15 = vsel %vm1591_vm15, %v521_v12, 0.0  ;;  %v506_v16 = vsel %vm313_vm4, %v501_v13, %v505_v11 }
  0xf2   : > { %525 = vst.msk [vmem:[#allocation4 + $0x16] ss:$8 sm:$0x3] %vm1517_vm6, %v523_v15  ;;  %v508_v17 = vsel %vm1600_vm7, %v506_v16, 0.0  ;;  %vm611_vm7 = vcmp.lt.s32.totalorder %v1502_v45, 32 }
  0xf3   : > { %510 = vst.msk [vmem:[#allocation4 + $0x15] ss:$8 sm:$0x3] %vm1517_vm6, %v508_v17 }
  0xf4   : > { %v544_v18 = vpop.permute.xlu1 %543 }
  0xf5   : > { %v539_v19 = vpop.permute.xlu0 %538 }
  0xf6   : > { %v546_v27 = vmul.f32 %v539_v19, %v1674_v20  ;;  %v547_v28 = vmul.f32 %v539_v19, %v1676_v21 }
  0xfa   : > { %v1678_v22 = vld [vmem:[#allocation4 + $0x10] sm:$0xff]  ;;  %v1680_v23 = vld [vmem:[#allocation4 + $0x18] sm:$0xff] }
  0xfb   : > { %v548_v25 = vmul.f32 %v544_v18, %v1678_v22  ;;  %v549_v26 = vmul.f32 %v544_v18, %v1680_v23  ;;  %v709_v63 = vmul.f32 %v705_v51, %v1678_v22  ;;  %v710_v6 = vmul.f32 %v705_v51, %v1680_v23 }
  0xfd   : > { %v550_v29 = vadd.f32 %v548_v25, %v546_v27  ;;  %v557_v30 = vadd.f32 %v549_v26, %v547_v28  ;;  %v748_v25 = vpop.permute.xlu2 %747 }
  0xfe   : > { %v587_v33 = vpop.permute.xlu1 %586  ;;  %v630_v34 = vpop.permute.xlu0 %629 }
  0xff   : > { %v551_v37 = vrot.slane %v550_v29, 4  ;;  %v558_v36 = vrot.slane %v557_v30, 4  ;;  %v591_v38 = vmul.f32 %v587_v33, %v1678_v22  ;;  %v592_v39 = vmul.f32 %v587_v33, %v1680_v23 }
 0x100   : > { %v634_v42 = vmul.f32 %v630_v34, %v1678_v22  ;;  %v635_v43 = vmul.f32 %v630_v34, %v1680_v23  ;;  %v753_v33 = vmul.f32 %v748_v25, %v1680_v23 }
 0x101   : > { %v552_v44 = vadd.f32 %v551_v37, %v550_v29  ;;  %v559_v46 = vadd.f32 %v558_v36, %v557_v30  ;;  %v593_v47 = vadd.f32 %v591_v38, %v589_v31  ;;  %v600_v35 = vadd.f32 %v592_v39, %v590_v32 }
 0x102   : > { %v636_v48 = vadd.f32 %v634_v42, %v632_v40  ;;  %v643_v49 = vadd.f32 %v635_v43, %v633_v41  ;;  %v752_v32 = vmul.f32 %v748_v25, %v1678_v22 }
 0x103   : > { %v553_v52 = vrot.slane %v552_v44, 2  ;;  %v560_v54 = vrot.slane %v559_v46, 2  ;;  %v594_v55 = vrot.slane %v593_v47, 4  ;;  %v601_v56 = vrot.slane %v600_v35, 4 }
 0x104   : > { %v637_v57 = vrot.slane %v636_v48, 4  ;;  %v644_v58 = vrot.slane %v643_v49, 4 }
 0x105   : > { %v595_v59 = vadd.f32 %v594_v55, %v593_v47  ;;  %v602_v60 = vadd.f32 %v601_v56, %v600_v35  ;;  %v561_v61 = vadd.f32 %v560_v54, %v559_v46  ;;  %v554_v62 = vadd.f32 %v553_v52, %v552_v44 }
 0x106   : > { %v638_v0 = vadd.f32 %v637_v57, %v636_v48  ;;  %v645_v2 = vadd.f32 %v644_v58, %v643_v49 }
 0x107   : > { %v596_v3 = vrot.slane %v595_v59, 2  ;;  %v603_v50 = vrot.slane %v602_v60, 2  ;;  %v701_v4 = vpop.permute.xlu1 %700  ;;  %v562_v5 = vrot.slane %v561_v61, 1  ;;  %v555_v1 = vrot.slane %v554_v62, 1 }
 0x108   : > { %v639_v7 = vrot.slane %v638_v0, 2  ;;  %v707_v8 = vmul.f32 %v701_v4, %v1674_v20  ;;  %v708_v9 = vmul.f32 %v701_v4, %v1676_v21  ;;  %v646_v10 = vrot.slane %v645_v2, 2  ;;  %v787_v54 = vpop.permute.xlu0 %786 }
 0x109   : > { %v563_v11 = vadd.f32 %v562_v5, %v561_v61  ;;  %v556_v12 = vadd.f32 %v555_v1, %v554_v62  ;;  %v597_v15 = vadd.f32 %v596_v3, %v595_v59  ;;  %v604_v17 = vadd.f32 %v603_v50, %v602_v60 }
 0x10a   : > { %v711_v13 = vadd.f32 %v709_v63, %v707_v8  ;;  %v718_v14 = vadd.f32 %v710_v6, %v708_v9  ;;  %v640_v16 = vadd.f32 %v639_v7, %v638_v0  ;;  %v647_v31 = vadd.f32 %v646_v10, %v645_v2  ;;  %v669_v10 = vpop.permute.xlu2 %668 }
 0x10b   : > { %566 = vrot.lane.b32.xlu0 %v563_v11, %s1307_s29  ;;  %564 = vrot.lane.b32.xlu2 %v556_v12, %s1307_s29  ;;  %v598_v24 = vrot.slane %v597_v15, 1  ;;  %v605_v27 = vrot.slane %v604_v17, 1  ;;  %v793_v62 = vmul.f32 %v787_v54, %v1674_v20  ;;  %v794_v63 = vmul.f32 %v787_v54, %v1676_v21 }
 0x10c   : > { %v712_v18 = vrot.slane %v711_v13, 4  ;;  %v719_v19 = vrot.slane %v718_v14, 4  ;;  %v641_v26 = vrot.slane %v640_v16, 1  ;;  %v648_v42 = vrot.slane %v647_v31, 1 }
 0x10d   : > { %v599_v30 = vadd.f32 %v598_v24, %v597_v15  ;;  %v606_v41 = vadd.f32 %v605_v27, %v604_v17  ;;  %v675_v17 = vmul.f32 %v669_v10, %v1674_v20 }
 0x10e   : > { %v713_v28 = vadd.f32 %v712_v18, %v711_v13  ;;  %v720_v29 = vadd.f32 %v719_v19, %v718_v14  ;;  %v642_v40 = vadd.f32 %v641_v26, %v640_v16  ;;  %v649_v52 = vadd.f32 %v648_v42, %v647_v31 }
 0x10f   : > { %607 = vrot.lane.b32.xlu1 %v599_v30, %s1308_s30  ;;  %v676_v18 = vmul.f32 %v669_v10, %v1676_v21 }
 0x110   : > { %v714_v34 = vrot.slane %v713_v28, 2  ;;  %v721_v37 = vrot.slane %v720_v29, 2  ;;  %v744_v36 = vpop.permute.xlu1 %743 }
 0x111   : > { %v750_v38 = vmul.f32 %v744_v36, %v1674_v20  ;;  %v751_v39 = vmul.f32 %v744_v36, %v1676_v21 }
 0x112   : > { %v722_v43 = vadd.f32 %v721_v37, %v720_v29  ;;  %v715_v44 = vadd.f32 %v714_v34, %v713_v28 }
 0x113   : > { %v754_v46 = vadd.f32 %v752_v32, %v750_v38  ;;  %v761_v47 = vadd.f32 %v753_v33, %v751_v39  ;;  %650 = vrot.lane.b32.xlu0 %v642_v40, %s1309_s4  ;;  %609 = vrot.lane.b32.xlu2 %v606_v41, %s1308_s30 }
 0x114   : > { %v723_v49 = vrot.slane %v722_v43, 1  ;;  %v716_v51 = vrot.slane %v715_v44, 1 }
 0x115   : > { %v755_v35 = vrot.slane %v754_v46, 4  ;;  %v762_v48 = vrot.slane %v761_v47, 4 }
 0x116   : > { %v724_v60 = vadd.f32 %v723_v49, %v722_v43  ;;  %v717_v61 = vadd.f32 %v716_v51, %v715_v44 }
 0x117   : > { %v756_v55 = vadd.f32 %v755_v35, %v754_v46  ;;  %v763_v56 = vadd.f32 %v762_v48, %v761_v47  ;;  %652 = vrot.lane.b32.xlu1 %v649_v52, %s1309_s4  ;;  %v297_v52 = vld [vmem:[#allocation5 + $0x1] ss:$2 sm:$0x3]  ;;  %s1217_s4 = scalar_lea.hbm %s1793_s3, 4 }
 0x118   : > { %vm614_vm15 = vcmp.ge.s32.totalorder %v297_v52, 2  ;;  %vm615_vm3 = vcmp.lt.s32.totalorder %v297_v52, 18  ;;  %vm571_vm8 = vcmp.ge.s32.totalorder %v297_v52, 3  ;;  %vm572_vm11 = vcmp.lt.s32.totalorder %v297_v52, 19  ;;  %p1219_p12 = scmp.lt.s32.totalorder %s1217_s4, %s1213_s28 }
 0x119   : > { %v757_v57 = vrot.slane %v756_v55, 2  ;;  %v764_v58 = vrot.slane %v763_v56, 2  ;;  %v791_v59 = vpop.permute.xlu1 %790  ;;  %vm657_vm12 = vcmp.ge.s32.totalorder %v297_v52, 1  ;;  %vm658_vm0 = vcmp.lt.s32.totalorder %v297_v52, 17  ;;  %vm1722_vm2 = vmand %vm614_vm15, %vm615_vm3 }
 0x11a   : > { %v795_v0 = vmul.f32 %v791_v59, %v1678_v22  ;;  %v796_v2 = vmul.f32 %v791_v59, %v1680_v23  ;;  %vm573_vm10 = vmand %vm571_vm8, %vm572_vm11  ;;  %vm776_vm15 = vcmp.lt.s32.totalorder %v297_v52, 14  ;;  %vm815_vm11 = vcmp.lt.s32.totalorder %v1502_v45, 80  ;;  %p1220_p13 = por %p1219_p12, %p1218_p11 }
 0x11b   : > { %727 = vrot.lane.b32.xlu0 %v724_v60, %s1310_s5  ;;  %725 = vrot.lane.b32.xlu2 %v717_v61, %s1310_s5  ;;  %v758_v3 = vadd.f32 %v757_v57, %v756_v55  ;;  %v765_v50 = vadd.f32 %v764_v58, %v763_v56  ;;  %vm659_vm1 = vmand %vm657_vm12, %vm658_vm0  ;;  %vm818_vm12 = vcmp.ge.s32.totalorder %v297_v52, 4294967293  ;;  %vm819_vm0 = vcmp.lt.s32.totalorder %v297_v52, 13 }
 0x11c   : > { %v797_v4 = vadd.f32 %v795_v0, %v793_v62  ;;  %v804_v5 = vadd.f32 %v796_v2, %v794_v63  ;;  %p1221_p0 = pnand %p1220_p13, %p1216_p8 }
 0x11d   : > { %v759_v1 = vrot.slane %v758_v3, 1  ;;  %v766_v6 = vrot.slane %v765_v50, 1 }
 0x11e   : > { %v798_v7 = vrot.slane %v797_v4, 4  ;;  %v805_v8 = vrot.slane %v804_v5, 4 }
 0x11f   : > { %v760_v9 = vadd.f32 %v759_v1, %v758_v3  ;;  %v767_v13 = vadd.f32 %v766_v6, %v765_v50 }
 0x120   : > { %v799_v11 = vadd.f32 %v798_v7, %v797_v4  ;;  %v806_v12 = vadd.f32 %v805_v8, %v804_v5 }
 0x121   : > { %768 = vrot.lane.b32.xlu1 %v760_v9, %s1311_s6 }
 0x122   : > { %v800_v14 = vrot.slane %v799_v11, 2  ;;  %v807_v15 = vrot.slane %v806_v12, 2  ;;  %v673_v16 = vpop.permute.xlu1 %672 }
 0x123   : > { %v677_v19 = vmul.f32 %v673_v16, %v1678_v22  ;;  %v678_v24 = vmul.f32 %v673_v16, %v1680_v23  ;;  %770 = vrot.lane.b32.xlu2 %v767_v13, %s1311_s6 }
 0x124   : > { %v801_v25 = vadd.f32 %v800_v14, %v799_v11  ;;  %v808_v26 = vadd.f32 %v807_v15, %v806_v12 }
 0x125   : > { %v679_v27 = vadd.f32 %v677_v19, %v675_v17  ;;  %v686_v28 = vadd.f32 %v678_v24, %v676_v18 }
 0x126   : > { %v802_v29 = vrot.slane %v801_v25, 1  ;;  %v809_v30 = vrot.slane %v808_v26, 1 }
 0x127   : > { %v680_v31 = vrot.slane %v679_v27, 4  ;;  %v687_v32 = vrot.slane %v686_v28, 4 }
 0x128   : > { %v803_v33 = vadd.f32 %v802_v29, %v801_v25  ;;  %v810_v34 = vadd.f32 %v809_v30, %v808_v26 }
 0x129   : > { %v681_v37 = vadd.f32 %v680_v31, %v679_v27  ;;  %v688_v36 = vadd.f32 %v687_v32, %v686_v28 }
 0x12a   : > { %811 = vrot.lane.b32.xlu0 %v803_v33, %s1312_s7  ;;  %813 = vrot.lane.b32.xlu1 %v810_v34, %s1312_s7 }
 0x12b   : > { %v682_v20 = vrot.slane %v681_v37, 2  ;;  %v689_v21 = vrot.slane %v688_v36, 2 }
 0x12d   : > { %v683_v22 = vadd.f32 %v682_v20, %v681_v37  ;;  %v690_v23 = vadd.f32 %v689_v21, %v688_v36 }
 0x12f   : > { %v684_v38 = vrot.slane %v683_v22, 1  ;;  %v691_v39 = vrot.slane %v690_v23, 1 }
 0x131   : > { %v692_v40 = vadd.f32 %v691_v39, %v690_v23  ;;  %v685_v41 = vadd.f32 %v684_v38, %v683_v22 }
 0x133   : > { %v695_v42 = vrot.slane %v692_v40, 7 }
 0x135   : > { %v696_v43 = vsel %vm313_vm4, %v685_v41, %v695_v42 }
 0x165   : > { %v565_v44 = vpop.permute.xlu2 %564 }
 0x16d   : > { %v610_v47 = vpop.permute.xlu2 %609 }
 0x175   : > { %v726_v51 = vpop.permute.xlu2 %725 }
 0x17d   : > { %v567_v46 = vpop.permute.xlu0 %566  ;;  %v771_v6 = vpop.permute.xlu2 %770 }
 0x17e   : > { %v569_v54 = vsel %vm568_vm13, %v565_v44, %v567_v46  ;;  %v570_v0 = vsel %vm568_vm13, %v567_v46, %v565_v44  ;;  %vm733_vm13 = vcmp.lt.s32.totalorder %v297_v52, 15 }
 0x17f   : > { %v576_v58 = vrot.slane %v569_v54, 7 }
 0x181   : > { %v608_v35 = vpop.permute.xlu1 %607  ;;  %v577_v3 = vsel %vm313_vm4, %v570_v0, %v576_v58 }
 0x182   : > { %v612_v49 = vsel %vm611_vm7, %v608_v35, %v610_v47  ;;  %v613_v60 = vsel %vm611_vm7, %v610_v47, %v608_v35  ;;  %v579_v1 = vsel %vm573_vm10, %v577_v3, 0.0  ;;  %vm732_vm7 = vcmp.ge.s32.totalorder %v297_v52, 4294967295 }
 0x183   : > { %v619_v55 = vrot.slane %v612_v49, 7  ;;  %vm734_vm3 = vmand %vm732_vm7, %vm733_vm13 }
 0x185   : > { %v651_v48 = vpop.permute.xlu0 %650  ;;  %v620_v62 = vsel %vm313_vm4, %v613_v60, %v619_v55 }
 0x186   : > { %v622_v4 = vsel %vm1722_vm2, %v620_v62, 0.0  ;;  %vm820_vm2 = vmand %vm818_vm12, %vm819_vm0 }
 0x187   : > { %v623_v9 = vadd.f32 %v622_v4, %v579_v1 }
 0x189   : > { %v653_v56 = vpop.permute.xlu1 %652 }
 0x18a   : > { %v655_v57 = vsel %vm654_vm14, %v651_v48, %v653_v56  ;;  %v656_v2 = vsel %vm654_vm14, %v653_v56, %v651_v48  ;;  %vm775_vm14 = vcmp.ge.s32.totalorder %v297_v52, 4294967294 }
 0x18b   : > { %v662_v59 = vrot.slane %v655_v57, 7  ;;  %vm777_vm8 = vmand %vm775_vm14, %vm776_vm15 }
 0x18d   : > { %v728_v63 = vpop.permute.xlu0 %727  ;;  %v663_v50 = vsel %vm313_vm4, %v656_v2, %v662_v59 }
 0x18e   : > { %v731_v5 = vsel %vm729_vm9, %v728_v63, %v726_v51  ;;  %v665_v7 = vsel %vm659_vm1, %v663_v50, 0.0  ;;  %v730_v14 = vsel %vm729_vm9, %v726_v51, %v728_v63 }
 0x18f   : > { %v737_v10 = vrot.slane %v731_v5, 7  ;;  %v666_v12 = vadd.f32 %v665_v7, %v623_v9 }
 0x191   : > { %v738_v15 = vsel %vm313_vm4, %v730_v14, %v737_v10  ;;  %v698_v17 = vadd.f32 %v696_v43, %v666_v12 }
 0x192   : > { %v740_v19 = vsel %vm734_vm3, %v738_v15, 0.0 }
 0x193   : > { %v769_v8 = vpop.permute.xlu1 %768  ;;  %v741_v28 = vadd.f32 %v740_v19, %v698_v17 }
 0x194   : > { %v774_v11 = vsel %vm772_vm5, %v771_v6, %v769_v8  ;;  %v773_v16 = vsel %vm772_vm5, %v769_v8, %v771_v6 }
 0x195   : > { %v780_v13 = vrot.slane %v774_v11, 7 }
 0x197   : > { %v781_v18 = vsel %vm313_vm4, %v773_v16, %v780_v13 }
 0x198   : > { %v783_v26 = vsel %vm777_vm8, %v781_v18, 0.0 }
 0x199   : > { %v784_v31 = vadd.f32 %v783_v26, %v741_v28 }
 0x19c   : > { %v812_v24 = vpop.permute.xlu0 %811  ;;  %v814_v25 = vpop.permute.xlu1 %813 }
 0x19d   : > { %v817_v27 = vsel %vm815_vm11, %v814_v25, %v812_v24  ;;  %v816_v30 = vsel %vm815_vm11, %v812_v24, %v814_v25 }
 0x19e   : > { %v823_v29 = vrot.slane %v817_v27, 7 }
 0x1a0   : > { %v824_v32 = vsel %vm313_vm4, %v816_v30, %v823_v29 }
 0x1a1   : > { %v826_v33 = vsel %vm820_vm2, %v824_v32, 0.0 }
 0x1a2   : > { %v827_v34 = vadd.f32 %v826_v33, %v784_v31 }
 0x1a4   : > { %v978_v37 = vmul.f32 -1.442695, %v827_v34 }
 0x1a6   : > { %1103 = vpow2.f32 %v978_v37 }
 0x1ac   : > { %v1104_v45 = vpop.eup %1103 }
 0x1ad   : > { %v831_v36 = vadd.f32 1.0, %v1104_v45 }
 0x1af   : > { %1105 = vrcp.f32 %v831_v36  ;;  %v843_v23 = vand.u32 2147483648, %v831_v36  ;;  %v841_v39 = vand.u32 2147483647, %v831_v36  ;;  %vm837_vm9 = vweird.f32 %v831_v36 }
 0x1b1   : > { %v844_v41 = vor.u32 1.1754944e-38, %v843_v23  ;;  %vm842_vm1 = vcmp.eq.f32.partialorder %v841_v39, 8.507059e+37 }
 0x1b5   : > { %v1106_v20 = vpop.eup %1105 }
 0x1b6   : > { %v833_v21 = vmul.f32 %v1106_v20, %v831_v36  ;;  %vm838_vm4 = vweird.f32 %v1106_v20 }
 0x1b7   : > { %vm839_vm10 = vmor %vm837_vm9, %vm838_vm4 }
 0x1b8   : > { %v834_v22 = vsub.f32 1.0, %v833_v21 }
 0x1ba   : > { %v835_v38 = vmul.f32 %v1106_v20, %v834_v22 }
 0x1bc   : > { %v836_v40 = vadd.f32 %v1106_v20, %v835_v38 }
 0x1be   : > { %v840_v42 = vsel %vm839_vm10, %v1106_v20, %v836_v40 }
 0x1bf   : > { %v845_v43 = vsel %vm842_vm1, %v844_v41, %v840_v42 }
 0x1c0   : > { %847 = vst.msk [vmem:[%s233_s20] sm:$0x3] %vm1517_vm6, %v845_v43 }
 0x1c1   : > { %1224 = shalt.err (!%p1221_p0)
}
 0x1c2   : > { %994 = dma.vmem_to_hbm [thread:$0]  (%p1412_p7), %s862_s23, 32, %s864_s24, %s849_s15  }
 0x1c3 PF: > { %s875_s10 = sand.u32 1, %s1267_s12   ;;  %p1008_p3 = pnand %p969_p9, %p1378_p6 }
 0x1c4   : > { %s876_s7 = scalar_lea.sflag [#allocation7], %s875_s10 }
 0x1c5   : > { %p1009_p5 = pneg %p1008_p3 }
 0x1c7   : > { %1262 = dma.done.wait (%p1009_p5), %s876_s7, 32  }
 0x1c8   : > { %1264 = vsyncadd (%p1009_p5), %s876_s7, 4294967264  ;;  %s18_s17 = sadd.s32 1, %s1287_s17   ;;  %s1821_s12 = smov %s1271_s13 }
 0x1c9   : > { %p15_p10 = scmp.ge.s32.totalorder %s18_s17, 4   ;;  %s1822_s13 = smov %s1275_s14 }
 0x1ca   : > { %s1823_s14 = smov %s1422_s26  ;;  %s1824_s15 = smov %s1283_s16 }
 0x1cb   : > { %s1825_s16 = smov %s1827_s8  ;;  %17 = sbr.rel (!%p15_p10) target bundleno = 6 (0x6), region = 108 }
 0x1d0   :  { %882 = vsyncpa [#allocation6], 1 }
 0x1d1   :  { %884 = vsyncpa [#allocation6 + $0x1], 1 }
 0x1d2   :  { %885 = vsyncpa [#allocation9], 1 }
 0x1d3   :  { %886 = vsyncpa [#allocation7], 1 }
 0x1d4   :  { %888 = vsyncpa [#allocation7 + $0x1], 1 }

</bundles_post_ra>
